<compile_context>
chip_gen: v5e
topology: v5e:2x2
jax: 0.10.0
libtpu: 0.0.40
codegen_flags: <defaults>
</compile_context>

<pallas_src>
import functools

import numpy as np
import jax
import jax.numpy as jnp
from jax import lax
from jax.experimental import pallas as pl
from jax.experimental.pallas import tpu as pltpu


def _round_up(v, m):
    return (v + m - 1) // m * m


# --------------------------------------------------------------------------
# In-kernel helpers
# --------------------------------------------------------------------------
def _conv3x3_relu(x, w_t, b, masks, wimg, L):
    """3x3 'same' conv + folded-BN bias + ReLU on channel-major images.

    x    : (Ci, L) f32, L = N*Ho*Wo pixels flattened row-major on lanes.
    w_t  : (Co, 9*Ci) f32, contraction index k = (ky*3 + kx)*Ci + ci.
    b    : (Co, 1) f32.
    masks: 9 lane masks ({0,1} f32, None == all-ones) that zero cross-row /
           cross-image wrap-around of the rolled taps.

    Each tap is a pltpu.roll (XLU lane rotation of an aligned buffer — no
    halo copy, no unaligned lane slices).  The 9 slabs concatenate on the
    sublane axis (Ci is a multiple of 8) into a single im2col matmul.
    """
    slabs = []
    for ky in range(3):
        for kx in range(3):
            off = (ky - 1) * wimg + (kx - 1)
            slab = x if off == 0 else pltpu.roll(x, (-off) % L, 1)
            m = masks[ky * 3 + kx]
            if m is not None:
                slab = slab * m
            slabs.append(slab)
    patches = jnp.concatenate(slabs, axis=0)               # (9*Ci, L)
    y = jnp.dot(w_t, patches, preferred_element_type=jnp.float32) + b
    return jnp.maximum(y, 0.0)                              # (Co, L)


def decoder_fused_kernel(x_ref, s_ref, mt_ref, wg_ref, w1_ref, w2_ref, b_ref,
                         o_ref, cat_ref, *, c0, cs, wimg, px_img):
    f32 = jnp.float32
    L = o_ref.shape[-1]

    # Packed biases: columns = [bg+bs, bo, b1, b2].
    b_all = b_ref[...]
    bgs, batt, b1, b2 = (b_all[:, 0:1], b_all[:, 1:2],
                         b_all[:, 2:3], b_all[:, 3:4])

    # Packed 1x1-conv weights: lanes = [ [wg|ws] (c0+cs cols) | w_att (co cols) ].
    w_all = wg_ref[...]
    wgs = w_all[:, :c0 + cs]
    watt = w_all[:, c0 + cs:]

    # Bilinear 2x upsample (align_corners=True): one lane-dense matmul against
    # the batch-block-diagonal interpolation matrix.
    xu = jnp.dot(x_ref[...], mt_ref[...], preferred_element_type=f32)  # (c0, L)

    # Build concat([xu, s]) ONCE in VMEM; it feeds the fused gate matmul and,
    # after scaling the skip rows in place, the first 3x3 conv.
    sval = s_ref[...]
    cat_ref[0:c0, :] = xu
    cat_ref[c0:, :] = sval

    # Attention gate: both 1x1 convs fused into one (co, c0+cs) matmul.
    a = jnp.maximum(
        jnp.dot(wgs, cat_ref[...], preferred_element_type=f32) + bgs, 0.0)
    att = jax.nn.sigmoid(
        jnp.dot(watt, a, preferred_element_type=f32) + batt)
    cat_ref[c0:, :] = att * sval          # in place: cat is now [xu ; att*s]

    # Border masks ({0,1} multipliers), hoisted once, shared by both convs.
    lane = lax.broadcasted_iota(jnp.int32, (1, L), 1)
    col = lane % wimg
    pos = lane % px_img
    not_top = (pos >= wimg).astype(f32)
    not_bot = (pos < px_img - wimg).astype(f32)
    not_left = (col > 0).astype(f32)
    not_right = (col < wimg - 1).astype(f32)
    row_m = (not_top, None, not_bot)
    col_m = (not_left, None, not_right)
    masks = []
    for ky in range(3):
        for kx in range(3):
            rm, cm = row_m[ky], col_m[kx]
            if rm is None:
                masks.append(cm)
            elif cm is None:
                masks.append(rm)
            else:
                masks.append(rm * cm)

    y1 = _conv3x3_relu(cat_ref[...], w1_ref[...], b1, masks, wimg, L)
    y2 = _conv3x3_relu(y1, w2_ref[...], b2, masks, wimg, L)
    o_ref[...] = y2.astype(o_ref.dtype)


# --------------------------------------------------------------------------
# Wrapper (pallas_call plumbing)
# --------------------------------------------------------------------------
def decoder_block_forward(x, s, kp):
    """x: (N, C0, H, W) NCHW, s: (N, Cs, 2H, 2W) NCHW -> (N, out_c, 2H, 2W)."""
    N, C0, H, W = x.shape
    _, Cs, Ho, Wo = s.shape
    cop = kp["biases"].shape[0]            # padded out channels (multiple of 8)
    csp = kp["w1"].shape[1] // 9 - C0      # padded skip channels
    out_c = kp["out_c"]
    HW, HoWo = H * W, Ho * Wo
    L = N * HoWo

    # Host-side interpolation matrix, block-diagonal over the lane-folded batch.
    a_h = make_interp_matrix(H, Ho)
    a_w = make_interp_matrix(W, Wo)
    mt = np.kron(a_h, a_w).T.astype(np.float32)                   # (HW, HoWo)
    mt_blk = jnp.asarray(np.kron(np.eye(N, dtype=np.float32), mt))  # (N*HW, L)

    # Layout plumbing: channel-major, batch folded onto the 128-lane axis.
    x2 = x.reshape(N, C0, HW).transpose(1, 0, 2).reshape(C0, N * HW)
    s2 = jnp.pad(s.reshape(N, Cs, HoWo), ((0, 0), (0, csp - Cs), (0, 0)))
    s2 = s2.transpose(1, 0, 2).reshape(csp, L)

    kern = functools.partial(decoder_fused_kernel, c0=C0, cs=csp,
                             wimg=Wo, px_img=HoWo)
    vmem = pl.BlockSpec(memory_space=pltpu.MemorySpace.VMEM)
    out = pl.pallas_call(
        kern,
        out_shape=jax.ShapeDtypeStruct((cop, L), jnp.float32),
        in_specs=[vmem] * 7,
        out_specs=vmem,
        scratch_shapes=[pltpu.VMEM((C0 + csp, L), jnp.float32)],
    )(x2, s2, mt_blk, kp["w_gate"], kp["w1"], kp["w2"], kp["biases"])

    # Back to NCHW, drop the channel padding.
    return out.reshape(cop, N, Ho, Wo).transpose(1, 0, 2, 3)[:, :out_c]


# --------------------------------------------------------------------------
# Parameter setup / packing
# --------------------------------------------------------------------------
def make_interp_matrix(n_in, n_out):
    """1-D bilinear interpolation matrix, align_corners=True (matches spec)."""
    a = np.zeros((n_out, n_in), np.float32)
    if n_in == 1:
        a[:, 0] = 1.0
        return a
    for i in range(n_out):
        src = i * (n_in - 1) / (n_out - 1)
        i0 = int(np.floor(src))
        i1 = min(i0 + 1, n_in - 1)
        f = src - i0
        a[i, i0] += 1.0 - f
        a[i, i1] += f
    return a


def fold_bn(w, b, gamma, beta, eps=1e-5):
    """Fold eval-mode BN (running_mean=0, running_var=1) into conv w/b.
    w has the output channel on its LAST axis."""
    scale = gamma / jnp.sqrt(1.0 + eps)
    return w * scale, b * scale + beta


def init_params(key, in_c, out_c):
    """Logical (unpadded) parameters; BN folded eval-mode."""
    c0, c1 = in_c
    ks = jax.random.split(key, 16)
    nrm = lambda k, shp, sc=0.1: sc * jax.random.normal(k, shp, jnp.float32)

    # attention_gate: Wg = 1x1 conv (c0->out_c) + BN
    wg, bg = nrm(ks[0], (c0, out_c)), nrm(ks[1], (out_c,))
    wg, bg = fold_bn(wg, bg, 1.0 + nrm(ks[2], (out_c,)), nrm(ks[3], (out_c,)))
    # attention_gate: Ws = 1x1 conv (c1->out_c) + BN
    ws, bs = nrm(ks[4], (c1, out_c)), nrm(ks[5], (out_c,))
    ws, bs = fold_bn(ws, bs, 1.0 + nrm(ks[6], (out_c,)), nrm(ks[7], (out_c,)))
    # attention_gate: output = 1x1 conv (out_c->out_c) + sigmoid (no BN)
    wo, bo = nrm(ks[8], (out_c, out_c)), nrm(ks[9], (out_c,))

    # conv_block: conv1 3x3 ((c0+out_c)->out_c) + BN, conv2 3x3 + BN
    ci1 = c0 + out_c
    w1, b1 = nrm(ks[10], (3, 3, ci1, out_c)), nrm(ks[11], (out_c,))
    w1, b1 = fold_bn(w1, b1, 1.0 + nrm(ks[12], (out_c,)), nrm(ks[13], (out_c,)))
    w2, b2 = nrm(ks[14], (3, 3, out_c, out_c)), nrm(ks[15], (out_c,))
    w2, b2 = fold_bn(w2, b2, jnp.ones((out_c,)), jnp.zeros((out_c,)))

    return {"wg": wg.T, "bg": bg, "ws": ws.T, "bs": bs, "wo": wo.T, "bo": bo,
            "w1": w1, "b1": b1, "w2": w2, "b2": b2}


def pack_params(p, in_c, out_c):
    """Pad channels to multiples of 8 and pack the kernel operands."""
    c0, c1 = in_c
    assert c1 == out_c, "attention gate requires skip channels == out channels"
    cop = _round_up(out_c, 8)          # padded out / attention channels
    csp = cop                          # padded skip channels (== out channels)

    def pad_to(a, shape):
        return jnp.pad(a, [(0, t - s) for s, t in zip(a.shape, shape)])

    # Fused + packed 1x1 weights: [ wg (c0) | ws (csp) | w_att (cop) ] on lanes.
    wg = pad_to(p["wg"], (cop, c0))
    ws = pad_to(p["ws"], (cop, csp))
    watt = pad_to(p["wo"], (cop, cop))
    w_gate = jnp.concatenate([wg, ws, watt], axis=1)        # (cop, c0+csp+cop)

    # Packed biases, columns = [bg+bs, bo, b1, b2].
    bgs = pad_to(p["bg"] + p["bs"], (cop,))
    batt = pad_to(p["bo"], (cop,))
    b1 = pad_to(p["b1"], (cop,))
    b2 = pad_to(p["b2"], (cop,))
    biases = jnp.stack([bgs, batt, b1, b2], axis=1)          # (cop, 4)

    # im2col conv weights, channel-padded; contraction k = tap*Ci_pad + ci.
    w1 = pad_to(p["w1"], (3, 3, c0 + csp, cop))
    w1 = w1.reshape(9 * (c0 + csp), cop).T                   # (cop, 9*(c0+csp))
    w2 = pad_to(p["w2"], (3, 3, cop, cop))
    w2 = w2.reshape(9 * cop, cop).T                          # (cop, 9*cop)

    return {"w_gate": w_gate, "biases": biases, "w1": w1, "w2": w2,
            "out_c": out_c}


# --------------------------------------------------------------------------
# Pure-JAX reference (same eval-mode BN folding) for verification
# --------------------------------------------------------------------------
def reference_forward(x, s, p, a_h, a_w):
    hi = lax.Precision.HIGHEST
    xu = jnp.einsum('oh,nchw->ncow', a_h, x, precision=hi)
    xu = jnp.einsum('pw,ncow->ncop', a_w, xu, precision=hi)

    def conv1x1(z, w_oc, b):
        return (jnp.einsum('oc,nchw->nohw', w_oc, z, precision=hi)
                + b[None, :, None, None])

    g = conv1x1(xu, p["wg"], p["bg"])
    t = conv1x1(s, p["ws"], p["bs"])
    a = jnp.maximum(g + t, 0.0)
    att = jax.nn.sigmoid(conv1x1(a, p["wo"], p["bo"]))
    cat = jnp.concatenate([xu, att * s], axis=1)

    dn = ('NCHW', 'HWIO', 'NCHW')
    y = lax.conv_general_dilated(cat, p["w1"], (1, 1), ((1, 1), (1, 1)),
                                 dimension_numbers=dn, precision=hi)
    y = jnp.maximum(y + p["b1"][None, :, None, None], 0.0)
    y = lax.conv_general_dilated(y, p["w2"], (1, 1), ((1, 1), (1, 1)),
                                 dimension_numbers=dn, precision=hi)
    return jnp.maximum(y + p["b2"][None, :, None, None], 0.0)


if __name__ == "__main__":
    # decoder_block(in_c=(8, 4), out_c=4), PyTorch NCHW shapes:
    #   x: low-res feature   (2, 8, 8, 8)
    #   s: skip connection   (2, 4, 16, 16)
    N, H, W = 2, 8, 8
    in_c, out_c = (8, 4), 4

    key = jax.random.PRNGKey(0)
    kx, ks_, kp_ = jax.random.split(key, 3)
    x = jax.random.normal(kx, (N, in_c[0], H, W), jnp.float32)
    s = jax.random.normal(ks_, (N, in_c[1], 2 * H, 2 * W), jnp.float32)

    params = init_params(kp_, in_c, out_c)
    kparams = pack_params(params, in_c, out_c)

    out = decoder_block_forward(x, s, kparams)
    out = jax.block_until_ready(out)

    a_h = jnp.asarray(make_interp_matrix(H, 2 * H))
    a_w = jnp.asarray(make_interp_matrix(W, 2 * W))
    ref = reference_forward(x, s, params, a_h, a_w)
    assert out.shape == (N, out_c, 2 * H, 2 * W), out.shape
    np.testing.assert_allclose(np.asarray(out), np.asarray(ref),
                               rtol=1e-3, atol=1e-3)
    print("KERNEL_OK")
</pallas_src>

<mosaic_0001>
module attributes {stable_mosaic.version = 11 : i64} {
  func.func @decoder_fused_kernel(%arg0: memref<8x128xf32, #tpu.memory_space<vmem>>, %arg1: memref<8x512xf32, #tpu.memory_space<vmem>>, %arg2: memref<128x512xf32, #tpu.memory_space<vmem>>, %arg3: memref<8x24xf32, #tpu.memory_space<vmem>>, %arg4: memref<8x144xf32, #tpu.memory_space<vmem>>, %arg5: memref<8x72xf32, #tpu.memory_space<vmem>>, %arg6: memref<8x4xf32, #tpu.memory_space<vmem>>, %arg7: memref<8x512xf32, #tpu.memory_space<vmem>>, %arg8: memref<16x512xf32, #tpu.memory_space<vmem>>) attributes {dimension_semantics = [], scalar_prefetch = 0 : i64, scratch_operands = 1 : i64, tpu.core_type = #tpu.core_type<tc>} {
    %c0 = arith.constant 0 : index
    %c0_0 = arith.constant 0 : index
    %0 = vector.load %arg6[%c0, %c0_0] : memref<8x4xf32, #tpu.memory_space<vmem>>, vector<8x4xf32>
    %1 = vector.extract_strided_slice %0 {offsets = [0, 0], sizes = [8, 1], strides = [1, 1]} : vector<8x4xf32> to vector<8x1xf32>
    %2 = vector.extract_strided_slice %0 {offsets = [0, 1], sizes = [8, 1], strides = [1, 1]} : vector<8x4xf32> to vector<8x1xf32>
    %3 = vector.extract_strided_slice %0 {offsets = [0, 2], sizes = [8, 1], strides = [1, 1]} : vector<8x4xf32> to vector<8x1xf32>
    %4 = vector.extract_strided_slice %0 {offsets = [0, 3], sizes = [8, 1], strides = [1, 1]} : vector<8x4xf32> to vector<8x1xf32>
    %c0_1 = arith.constant 0 : index
    %c0_2 = arith.constant 0 : index
    %5 = vector.load %arg3[%c0_1, %c0_2] : memref<8x24xf32, #tpu.memory_space<vmem>>, vector<8x24xf32>
    %6 = vector.extract_strided_slice %5 {offsets = [0, 0], sizes = [8, 16], strides = [1, 1]} : vector<8x24xf32> to vector<8x16xf32>
    %7 = vector.extract_strided_slice %5 {offsets = [0, 16], sizes = [8, 8], strides = [1, 1]} : vector<8x24xf32> to vector<8x8xf32>
    %c0_3 = arith.constant 0 : index
    %c0_4 = arith.constant 0 : index
    %8 = vector.load %arg0[%c0_3, %c0_4] : memref<8x128xf32, #tpu.memory_space<vmem>>, vector<8x128xf32>
    %c0_5 = arith.constant 0 : index
    %c0_6 = arith.constant 0 : index
    %9 = vector.load %arg2[%c0_5, %c0_6] : memref<128x512xf32, #tpu.memory_space<vmem>>, vector<128x512xf32>
    %cst = arith.constant dense<0.000000e+00> : vector<8x512xf32>
    %10 = tpu.matmul %8, %9, %cst {dimension_numbers = #tpu.dot_dimension_numbers<[1], [0], [0], [1], [0, 0, 1, 1], [], []>} : vector<8x128xf32>, vector<128x512xf32>, vector<8x512xf32> -> vector<8x512xf32>
    %c0_7 = arith.constant 0 : index
    %c0_8 = arith.constant 0 : index
    %11 = vector.load %arg1[%c0_7, %c0_8] : memref<8x512xf32, #tpu.memory_space<vmem>>, vector<8x512xf32>
    %c0_9 = arith.constant 0 : index
    %c0_10 = arith.constant 0 : index
    %12 = vector.load %arg8[%c0_9, %c0_10] : memref<16x512xf32, #tpu.memory_space<vmem>>, vector<8x512xf32>
    tpu.vector_store %arg8[%c0_9, %c0_10], %10 {strides = array<i32>} : memref<16x512xf32, #tpu.memory_space<vmem>>, vector<8x512xf32>,
    %c8 = arith.constant 8 : index
    %c0_11 = arith.constant 0 : index
    %13 = vector.load %arg8[%c8, %c0_11] : memref<16x512xf32, #tpu.memory_space<vmem>>, vector<8x512xf32>
    tpu.vector_store %arg8[%c8, %c0_11], %11 {strides = array<i32>} : memref<16x512xf32, #tpu.memory_space<vmem>>, vector<8x512xf32>,
    %c0_12 = arith.constant 0 : index
    %c0_13 = arith.constant 0 : index
    %14 = vector.load %arg8[%c0_12, %c0_13] : memref<16x512xf32, #tpu.memory_space<vmem>>, vector<16x512xf32>
    %cst_14 = arith.constant dense<0.000000e+00> : vector<8x512xf32>
    %15 = tpu.matmul %6, %14, %cst_14 {dimension_numbers = #tpu.dot_dimension_numbers<[1], [0], [0], [1], [0, 0, 1, 1], [], []>} : vector<8x16xf32>, vector<16x512xf32>, vector<8x512xf32> -> vector<8x512xf32>
    %16 = vector.broadcast %1 : vector<8x1xf32> to vector<8x512xf32>
    %17 = arith.addf %15, %16 : vector<8x512xf32>
    %cst_15 = arith.constant 0.000000e+00 : f32
    %18 = vector.broadcast %cst_15 : f32 to vector<8x512xf32>
    %19 = arith.maximumf %17, %18 : vector<8x512xf32>
    %cst_16 = arith.constant dense<0.000000e+00> : vector<8x512xf32>
    %20 = tpu.matmul %7, %19, %cst_16 {dimension_numbers = #tpu.dot_dimension_numbers<[1], [0], [0], [1], [0, 0, 1, 1], [], []>} : vector<8x8xf32>, vector<8x512xf32>, vector<8x512xf32> -> vector<8x512xf32>
    %21 = vector.broadcast %2 : vector<8x1xf32> to vector<8x512xf32>
    %22 = arith.addf %20, %21 : vector<8x512xf32>
    %23 = arith.negf %22 : vector<8x512xf32>
    %24 = math.exp %23 : vector<8x512xf32>
    %cst_17 = arith.constant 1.000000e+00 : f32
    %25 = vector.broadcast %cst_17 : f32 to vector<8x512xf32>
    %26 = arith.addf %25, %24 : vector<8x512xf32>
    %27 = arith.divf %25, %26 : vector<8x512xf32>
    %28 = arith.mulf %27, %11 : vector<8x512xf32>
    %c8_18 = arith.constant 8 : index
    %c0_19 = arith.constant 0 : index
    %29 = vector.load %arg8[%c8_18, %c0_19] : memref<16x512xf32, #tpu.memory_space<vmem>>, vector<8x512xf32>
    tpu.vector_store %arg8[%c8_18, %c0_19], %28 {strides = array<i32>} : memref<16x512xf32, #tpu.memory_space<vmem>>, vector<8x512xf32>,
    %30 = tpu.iota {dimensions = array<i32: 1>} : vector<1x512xi32>
    %c16_i32 = arith.constant 16 : i32
    %c0_i32 = arith.constant 0 : i32
    %31 = arith.cmpi eq, %c16_i32, %c0_i32 : i32
    %c1_i32 = arith.constant 1 : i32
    %32 = arith.select %31, %c1_i32, %c16_i32 : i32
    %33 = vector.broadcast %32 : i32 to vector<1x512xi32>
    %34 = arith.remsi %30, %33 : vector<1x512xi32>
    %c0_i32_20 = arith.constant 0 : i32
    %35 = vector.broadcast %c0_i32_20 : i32 to vector<1x512xi32>
    %36 = arith.cmpi ne, %34, %35 : vector<1x512xi32>
    %c0_i32_21 = arith.constant 0 : i32
    %37 = vector.broadcast %c0_i32_21 : i32 to vector<1x512xi32>
    %38 = arith.cmpi slt, %34, %37 : vector<1x512xi32>
    %c0_i32_22 = arith.constant 0 : i32
    %39 = arith.cmpi slt, %32, %c0_i32_22 : i32
    %40 = vector.broadcast %39 : i1 to vector<1x512xi1>
    %41 = vector.broadcast %40 : vector<1x512xi1> to vector<1x512xi1>
    %42 = arith.xori %38, %41 : vector<1x512xi1>
    %43 = arith.andi %42, %36 : vector<1x512xi1>
    %44 = vector.broadcast %32 : i32 to vector<1x512xi32>
    %45 = arith.addi %34, %44 : vector<1x512xi32>
    %46 = arith.select %43, %45, %34 : vector<1x512xi1>, vector<1x512xi32>
    %c256_i32 = arith.constant 256 : i32
    %c0_i32_23 = arith.constant 0 : i32
    %47 = arith.cmpi eq, %c256_i32, %c0_i32_23 : i32
    %c1_i32_24 = arith.constant 1 : i32
    %48 = arith.select %47, %c1_i32_24, %c256_i32 : i32
    %49 = vector.broadcast %48 : i32 to vector<1x512xi32>
    %50 = arith.remsi %30, %49 : vector<1x512xi32>
    %c0_i32_25 = arith.constant 0 : i32
    %51 = vector.broadcast %c0_i32_25 : i32 to vector<1x512xi32>
    %52 = arith.cmpi ne, %50, %51 : vector<1x512xi32>
    %c0_i32_26 = arith.constant 0 : i32
    %53 = vector.broadcast %c0_i32_26 : i32 to vector<1x512xi32>
    %54 = arith.cmpi slt, %50, %53 : vector<1x512xi32>
    %c0_i32_27 = arith.constant 0 : i32
    %55 = arith.cmpi slt, %48, %c0_i32_27 : i32
    %56 = vector.broadcast %55 : i1 to vector<1x512xi1>
    %57 = vector.broadcast %56 : vector<1x512xi1> to vector<1x512xi1>
    %58 = arith.xori %54, %57 : vector<1x512xi1>
    %59 = arith.andi %58, %52 : vector<1x512xi1>
    %60 = vector.broadcast %48 : i32 to vector<1x512xi32>
    %61 = arith.addi %50, %60 : vector<1x512xi32>
    %62 = arith.select %59, %61, %50 : vector<1x512xi1>, vector<1x512xi32>
    %c16_i32_28 = arith.constant 16 : i32
    %63 = vector.broadcast %c16_i32_28 : i32 to vector<1x512xi32>
    %64 = arith.cmpi sge, %62, %63 : vector<1x512xi32>
    %65 = arith.extui %64 : vector<1x512xi1> to vector<1x512xi32>
    %66 = arith.sitofp %65 : vector<1x512xi32> to vector<1x512xf32>
    %c240_i32 = arith.constant 240 : i32
    %67 = vector.broadcast %c240_i32 : i32 to vector<1x512xi32>
    %68 = arith.cmpi slt, %62, %67 : vector<1x512xi32>
    %69 = arith.extui %68 : vector<1x512xi1> to vector<1x512xi32>
    %70 = arith.sitofp %69 : vector<1x512xi32> to vector<1x512xf32>
    %c0_i32_29 = arith.constant 0 : i32
    %71 = vector.broadcast %c0_i32_29 : i32 to vector<1x512xi32>
    %72 = arith.cmpi sgt, %46, %71 : vector<1x512xi32>
    %73 = arith.extui %72 : vector<1x512xi1> to vector<1x512xi32>
    %74 = arith.sitofp %73 : vector<1x512xi32> to vector<1x512xf32>
    %c15_i32 = arith.constant 15 : i32
    %75 = vector.broadcast %c15_i32 : i32 to vector<1x512xi32>
    %76 = arith.cmpi slt, %46, %75 : vector<1x512xi32>
    %77 = arith.extui %76 : vector<1x512xi1> to vector<1x512xi32>
    %78 = arith.sitofp %77 : vector<1x512xi32> to vector<1x512xf32>
    %79 = arith.mulf %66, %74 : vector<1x512xf32>
    %80 = arith.mulf %66, %78 : vector<1x512xf32>
    %81 = arith.mulf %70, %74 : vector<1x512xf32>
    %82 = arith.mulf %70, %78 : vector<1x512xf32>
    %c0_30 = arith.constant 0 : index
    %c0_31 = arith.constant 0 : index
    %83 = vector.load %arg8[%c0_30, %c0_31] : memref<16x512xf32, #tpu.memory_space<vmem>>, vector<16x512xf32>
    %c0_32 = arith.constant 0 : index
    %c0_33 = arith.constant 0 : index
    %84 = vector.load %arg4[%c0_32, %c0_33] : memref<8x144xf32, #tpu.memory_space<vmem>>, vector<8x144xf32>
    %c17_i32 = arith.constant 17 : i32
    %85 = tpu.dynamic_rotate %83 by %c17_i32 dim 1 : vector<16x512xf32>, i32 -> vector<16x512xf32>
    %86 = vector.broadcast %79 : vector<1x512xf32> to vector<16x512xf32>
    %87 = arith.mulf %85, %86 : vector<16x512xf32>
    %c16_i32_34 = arith.constant 16 : i32
    %88 = tpu.dynamic_rotate %83 by %c16_i32_34 dim 1 : vector<16x512xf32>, i32 -> vector<16x512xf32>
    %89 = vector.broadcast %66 : vector<1x512xf32> to vector<16x512xf32>
    %90 = arith.mulf %88, %89 : vector<16x512xf32>
    %c15_i32_35 = arith.constant 15 : i32
    %91 = tpu.dynamic_rotate %83 by %c15_i32_35 dim 1 : vector<16x512xf32>, i32 -> vector<16x512xf32>
    %92 = vector.broadcast %80 : vector<1x512xf32> to vector<16x512xf32>
    %93 = arith.mulf %91, %92 : vector<16x512xf32>
    %c1_i32_36 = arith.constant 1 : i32
    %94 = tpu.dynamic_rotate %83 by %c1_i32_36 dim 1 : vector<16x512xf32>, i32 -> vector<16x512xf32>
    %95 = vector.broadcast %74 : vector<1x512xf32> to vector<16x512xf32>
    %96 = arith.mulf %94, %95 : vector<16x512xf32>
    %c511_i32 = arith.constant 511 : i32
    %97 = tpu.dynamic_rotate %83 by %c511_i32 dim 1 : vector<16x512xf32>, i32 -> vector<16x512xf32>
    %98 = vector.broadcast %78 : vector<1x512xf32> to vector<16x512xf32>
    %99 = arith.mulf %97, %98 : vector<16x512xf32>
    %c497_i32 = arith.constant 497 : i32
    %100 = tpu.dynamic_rotate %83 by %c497_i32 dim 1 : vector<16x512xf32>, i32 -> vector<16x512xf32>
    %101 = vector.broadcast %81 : vector<1x512xf32> to vector<16x512xf32>
    %102 = arith.mulf %100, %101 : vector<16x512xf32>
    %c496_i32 = arith.constant 496 : i32
    %103 = tpu.dynamic_rotate %83 by %c496_i32 dim 1 : vector<16x512xf32>, i32 -> vector<16x512xf32>
    %104 = vector.broadcast %70 : vector<1x512xf32> to vector<16x512xf32>
    %105 = arith.mulf %103, %104 : vector<16x512xf32>
    %c495_i32 = arith.constant 495 : i32
    %106 = tpu.dynamic_rotate %83 by %c495_i32 dim 1 : vector<16x512xf32>, i32 -> vector<16x512xf32>
    %107 = vector.broadcast %82 : vector<1x512xf32> to vector<16x512xf32>
    %108 = arith.mulf %106, %107 : vector<16x512xf32>
    %109 = tpu.concatenate %87, %90, %93, %96, %83, %99, %102, %105, %108 in 0 : vector<16x512xf32>, vector<16x512xf32>, vector<16x512xf32>, vector<16x512xf32>, vector<16x512xf32>, vector<16x512xf32>, vector<16x512xf32>, vector<16x512xf32>, vector<16x512xf32> -> vector<144x512xf32>
    %cst_37 = arith.constant dense<0.000000e+00> : vector<8x512xf32>
    %110 = tpu.matmul %84, %109, %cst_37 {dimension_numbers = #tpu.dot_dimension_numbers<[1], [0], [0], [1], [0, 0, 1, 1], [], []>} : vector<8x144xf32>, vector<144x512xf32>, vector<8x512xf32> -> vector<8x512xf32>
    %111 = vector.broadcast %3 : vector<8x1xf32> to vector<8x512xf32>
    %112 = arith.addf %110, %111 : vector<8x512xf32>
    %cst_38 = arith.constant 0.000000e+00 : f32
    %113 = vector.broadcast %cst_38 : f32 to vector<8x512xf32>
    %114 = arith.maximumf %112, %113 : vector<8x512xf32>
    %c0_39 = arith.constant 0 : index
    %c0_40 = arith.constant 0 : index
    %115 = vector.load %arg5[%c0_39, %c0_40] : memref<8x72xf32, #tpu.memory_space<vmem>>, vector<8x72xf32>
    %c17_i32_41 = arith.constant 17 : i32
    %116 = tpu.dynamic_rotate %114 by %c17_i32_41 dim 1 : vector<8x512xf32>, i32 -> vector<8x512xf32>
    %117 = vector.broadcast %79 : vector<1x512xf32> to vector<8x512xf32>
    %118 = arith.mulf %116, %117 : vector<8x512xf32>
    %c16_i32_42 = arith.constant 16 : i32
    %119 = tpu.dynamic_rotate %114 by %c16_i32_42 dim 1 : vector<8x512xf32>, i32 -> vector<8x512xf32>
    %120 = vector.broadcast %66 : vector<1x512xf32> to vector<8x512xf32>
    %121 = arith.mulf %119, %120 : vector<8x512xf32>
    %c15_i32_43 = arith.constant 15 : i32
    %122 = tpu.dynamic_rotate %114 by %c15_i32_43 dim 1 : vector<8x512xf32>, i32 -> vector<8x512xf32>
    %123 = vector.broadcast %80 : vector<1x512xf32> to vector<8x512xf32>
    %124 = arith.mulf %122, %123 : vector<8x512xf32>
    %c1_i32_44 = arith.constant 1 : i32
    %125 = tpu.dynamic_rotate %114 by %c1_i32_44 dim 1 : vector<8x512xf32>, i32 -> vector<8x512xf32>
    %126 = vector.broadcast %74 : vector<1x512xf32> to vector<8x512xf32>
    %127 = arith.mulf %125, %126 : vector<8x512xf32>
    %c511_i32_45 = arith.constant 511 : i32
    %128 = tpu.dynamic_rotate %114 by %c511_i32_45 dim 1 : vector<8x512xf32>, i32 -> vector<8x512xf32>
    %129 = vector.broadcast %78 : vector<1x512xf32> to vector<8x512xf32>
    %130 = arith.mulf %128, %129 : vector<8x512xf32>
    %c497_i32_46 = arith.constant 497 : i32
    %131 = tpu.dynamic_rotate %114 by %c497_i32_46 dim 1 : vector<8x512xf32>, i32 -> vector<8x512xf32>
    %132 = vector.broadcast %81 : vector<1x512xf32> to vector<8x512xf32>
    %133 = arith.mulf %131, %132 : vector<8x512xf32>
    %c496_i32_47 = arith.constant 496 : i32
    %134 = tpu.dynamic_rotate %114 by %c496_i32_47 dim 1 : vector<8x512xf32>, i32 -> vector<8x512xf32>
    %135 = vector.broadcast %70 : vector<1x512xf32> to vector<8x512xf32>
    %136 = arith.mulf %134, %135 : vector<8x512xf32>
    %c495_i32_48 = arith.constant 495 : i32
    %137 = tpu.dynamic_rotate %114 by %c495_i32_48 dim 1 : vector<8x512xf32>, i32 -> vector<8x512xf32>
    %138 = vector.broadcast %82 : vector<1x512xf32> to vector<8x512xf32>
    %139 = arith.mulf %137, %138 : vector<8x512xf32>
    %140 = tpu.concatenate %118, %121, %124, %127, %114, %130, %133, %136, %139 in 0 : vector<8x512xf32>, vector<8x512xf32>, vector<8x512xf32>, vector<8x512xf32>, vector<8x512xf32>, vector<8x512xf32>, vector<8x512xf32>, vector<8x512xf32>, vector<8x512xf32> -> vector<72x512xf32>
    %cst_49 = arith.constant dense<0.000000e+00> : vector<8x512xf32>
    %141 = tpu.matmul %115, %140, %cst_49 {dimension_numbers = #tpu.dot_dimension_numbers<[1], [0], [0], [1], [0, 0, 1, 1], [], []>} : vector<8x72xf32>, vector<72x512xf32>, vector<8x512xf32> -> vector<8x512xf32>
    %142 = vector.broadcast %4 : vector<8x1xf32> to vector<8x512xf32>
    %143 = arith.addf %141, %142 : vector<8x512xf32>
    %cst_50 = arith.constant 0.000000e+00 : f32
    %144 = vector.broadcast %cst_50 : f32 to vector<8x512xf32>
    %145 = arith.maximumf %143, %144 : vector<8x512xf32>
    %c0_51 = arith.constant 0 : index
    %c0_52 = arith.constant 0 : index
    %146 = vector.load %arg7[%c0_51, %c0_52] : memref<8x512xf32, #tpu.memory_space<vmem>>, vector<8x512xf32>
    tpu.vector_store %arg7[%c0_51, %c0_52], %145 {strides = array<i32>} : memref<8x512xf32, #tpu.memory_space<vmem>>, vector<8x512xf32>,
    return
  }
}

</mosaic_0001>

<bundles_post_ra>
// kernel: tpu_custom_call.1
= control target key start
LH: loop header
LB: loop body
LE: loop exit
PB: predicated region body
PF: predicated region fallthrough
CT: control target
= control target key end

     0   :  { %12 = vsyncpa [#allocation4], 0  ;;  %s2642_s0 = inlined_call_operand.vmem [shape: f32[8,128], index: 0, kind: input, shape index: {}]   ;;  %s2643_s1 = inlined_call_operand.hbm [shape: f32[8,512], index: 1, kind: input, shape index: {}]   ;;  %s2644_s2 = inlined_call_operand.hbm [shape: f32[128,512], index: 2, kind: input, shape index: {}]   ;;  %s2645_s3 = inlined_call_operand.hbm [shape: f32[8,24], index: 3, kind: input, shape index: {}]   ;;  %s2646_s4 = inlined_call_operand.hbm [shape: f32[8,144], index: 4, kind: input, shape index: {}]   ;;  %s2647_s5 = inlined_call_operand.hbm [shape: f32[8,72], index: 5, kind: input, shape index: {}]   ;;  %s2648_s6 = inlined_call_operand.vmem [shape: f32[8,4], index: 6, kind: input, shape index: {}]   ;;  %s2649_s7 = inlined_call_operand.hbm [shape: f32[8,512], index: 7, kind: output, shape index: {}]  }
   0x1   :  { %13 = vsyncpa [#allocation7], 0 }
   0x2   :  { %14 = vsyncpa [#allocation10], 0  ;;  %s33_s26 = sshll.u32 %s2644_s2, 4  ;;  %s34_s26 = int_to_ptr.hbm [resolvable:$true] %s33_s26 }
   0x3   :  { %15 = vsyncpa [#allocation5], 0  ;;  %s1611_s27 = smov [#allocation6]   ;;  %s58_s8 = sshll.u32 %s2646_s4, 4  ;;  %s59_s8 = int_to_ptr.hbm [resolvable:$true] %s58_s8 }
   0x4   :  { %s35_s28 = sshll.u32 %s1611_s27, 4  ;;  %s1612_s9 = smov 512   ;;  %s36_s28 = int_to_ptr.vmem [resolvable:$true] %s35_s28 }
   0x5   :  { %s1613_s10 = smov 32   ;;  %s1614_s11 = smov [#allocation9]  }
   0x6   :  { %41 = dma.hbm_to_vmem [thread:$0]  %s34_s26, 8192, %s36_s28, [#allocation7], %s1612_s9, %s1612_s9, %s1613_s10  }
   0x7   :  { %s60_s12 = sshll.u32 %s1614_s11, 4  ;;  %s23_s15 = sshll.u32 %s2643_s1, 4  ;;  %s61_s12 = int_to_ptr.vmem [resolvable:$true] %s60_s12  ;;  %s24_s15 = int_to_ptr.hbm [resolvable:$true] %s23_s15 }
   0x8   :  { %63 = dma.hbm_to_vmem [thread:$0]  %s59_s8, 256, %s61_s12, [#allocation10]  }
   0x9   :  { %s47_s17 = sshll.u32 %s2645_s3, 4  ;;  %s1615_s18 = smov [#allocation3]   ;;  %s48_s17 = int_to_ptr.hbm [resolvable:$true] %s47_s17 }
   0xa   :  { %s25_s19 = sshll.u32 %s1615_s18, 4  ;;  %s1616_s4 = smov [#allocation8]   ;;  %s26_s19 = int_to_ptr.vmem [resolvable:$true] %s25_s19 }
   0xb   :  { %28 = dma.hbm_to_vmem [thread:$0]  %s24_s15, 512, %s26_s19, [#allocation4]  }
   0xc   :  { %s49_s20 = sshll.u32 %s1616_s4, 4  ;;  %s69_s23 = sshll.u32 %s2647_s5, 4  ;;  %s50_s20 = int_to_ptr.vmem [resolvable:$true] %s49_s20  ;;  %s70_s23 = int_to_ptr.hbm [resolvable:$true] %s69_s23 }
   0xd   :  { %52 = dma.hbm_to_vmem [thread:$0]  %s48_s17, 128, %s50_s20, [#allocation7]  }
   0xe   :  { %s1617_s1 = smov [#allocation11]  }
   0xf   :  { %s71_s24 = sshll.u32 %s1617_s1, 4  ;;  %s72_s24 = int_to_ptr.vmem [resolvable:$true] %s71_s24 }
  0x10   :  { %74 = dma.hbm_to_vmem [thread:$0]  %s70_s23, 128, %s72_s24, [#allocation10]  }
  0x11   :  { %1603 = dma.done.wait [#allocation4], 512  }
  0x12   :  { %1604 = vsyncadd [#allocation4], 4294966784 }
  0x13   :  { %1605 = dma.done.wait [#allocation7], 8320  }
  0x14   :  { %1606 = vsyncadd [#allocation7], 4294958976 }
  0x15   :  { %1607 = dma.done.wait [#allocation10], 384  }
  0x16   :  { %1608 = vsyncadd [#allocation10], 4294966912  ;;  %v160_v0 = vld [vmem:[#allocation6 + $0x1e0] sm:$0xff]  ;;  %v161_v1 = vld [vmem:[#allocation6 + $0x1e8] sm:$0xff]  ;;  %vm269_vm0 = vcmask 130048   ;;  %s1621_s27 = smov 113  }
  0x17   :  { %v162_v2 = vld [vmem:[#allocation6 + $0x1f0] sm:$0xff]  ;;  %164 = vmatpush.msra.mxu0 %v160_v0  ;;  %184 = vmatpush.msra.mxu1 %v161_v1  ;;  %v156_v3 = vld [vmem:[#allocation6 + $0x1c0] sm:$0xff]  ;;  %v157_v4 = vld [vmem:[#allocation6 + $0x1c8] sm:$0xff]  ;;  %v1618_v1 = vmov 0   ;;  %s1622_s28 = smov 111   ;;  %s1623_s29 = smov 127  }
  0x18   :  { %v158_v5 = vld [vmem:[#allocation6 + $0x1d0] sm:$0xff]  ;;  %204 = vmatpush.msra.mxu2 %v162_v2  ;;  %v152_v6 = vld [vmem:[#allocation6 + $0x1a0] sm:$0xff]  ;;  %v153_v7 = vld [vmem:[#allocation6 + $0x1a8] sm:$0xff]  ;;  %1437 = vset.pattern.permute.xlu0 %v1618_v1  ;;  %s1624_s30 = smov 1   ;;  %s1625_s8 = smov 15   ;;  %vm363_vm4 = vcmask 64512  }
  0x19   :  { %165 = vmatpush.msra.mxu0 %v156_v3  ;;  %185 = vmatpush.msra.mxu1 %v157_v4  ;;  %v154_v8 = vld [vmem:[#allocation6 + $0x1b0] sm:$0xff]  ;;  %v148_v9 = vld [vmem:[#allocation6 + $0x180] sm:$0xff]  ;;  %v149_v10 = vld [vmem:[#allocation6 + $0x188] sm:$0xff]  ;;  %s1626_s9 = smov 16   ;;  %s1627_s10 = smov 17  }
  0x1a   :  { %205 = vmatpush.msra.mxu2 %v158_v5  ;;  %v150_v11 = vld [vmem:[#allocation6 + $0x190] sm:$0xff]  ;;  %v163_v12 = vld [vmem:[#allocation6 + $0x1f8] sm:$0xff]  ;;  %v144_v13 = vld [vmem:[#allocation6 + $0x160] sm:$0xff]  ;;  %v1619_v5 = vmov 1   ;;  %s1372_s2 = sshll.u32 %s2649_s7, 4  ;;  %s1373_s2 = int_to_ptr.hbm [resolvable:$true] %s1372_s2 }
  0x1b   :  { %166 = vmatpush.msra.mxu0 %v152_v6  ;;  %186 = vmatpush.msra.mxu1 %v153_v7  ;;  %v145_v14 = vld [vmem:[#allocation6 + $0x168] sm:$0xff]  ;;  %v159_v15 = vld [vmem:[#allocation6 + $0x1d8] sm:$0xff]  ;;  %v146_v16 = vld [vmem:[#allocation6 + $0x170] sm:$0xff] }
  0x1c   :  { %206 = vmatpush.msra.mxu2 %v154_v8  ;;  %224 = vmatpush.msra.mxu3 %v163_v12  ;;  %v155_v17 = vld [vmem:[#allocation6 + $0x1b8] sm:$0xff]  ;;  %v140_v18 = vld [vmem:[#allocation6 + $0x140] sm:$0xff]  ;;  %v141_v19 = vld [vmem:[#allocation6 + $0x148] sm:$0xff] }
  0x1d   :  { %167 = vmatpush.msra.mxu0 %v148_v9  ;;  %187 = vmatpush.msra.mxu1 %v149_v10  ;;  %v142_v20 = vld [vmem:[#allocation6 + $0x150] sm:$0xff]  ;;  %v151_v21 = vld [vmem:[#allocation6 + $0x198] sm:$0xff]  ;;  %v136_v22 = vld [vmem:[#allocation6 + $0x120] sm:$0xff] }
  0x1e   :  { %207 = vmatpush.msra.mxu2 %v150_v11  ;;  %225 = vmatpush.msra.mxu3 %v159_v15  ;;  %v137_v23 = vld [vmem:[#allocation6 + $0x128] sm:$0xff]  ;;  %v138_v24 = vld [vmem:[#allocation6 + $0x130] sm:$0xff]  ;;  %v147_v25 = vld [vmem:[#allocation6 + $0x178] sm:$0xff] }
  0x1f   :  { %168 = vmatpush.msra.mxu0 %v144_v13  ;;  %188 = vmatpush.msra.mxu1 %v145_v14  ;;  %v132_v26 = vld [vmem:[#allocation6 + $0x100] sm:$0xff]  ;;  %v133_v27 = vld [vmem:[#allocation6 + $0x108] sm:$0xff]  ;;  %v134_v28 = vld [vmem:[#allocation6 + $0x110] sm:$0xff] }
  0x20   :  { %208 = vmatpush.msra.mxu2 %v146_v16  ;;  %226 = vmatpush.msra.mxu3 %v155_v17  ;;  %v143_v29 = vld [vmem:[#allocation6 + $0x158] sm:$0xff]  ;;  %v128_v30 = vld [vmem:[#allocation6 + $0xe0] sm:$0xff]  ;;  %v129_v31 = vld [vmem:[#allocation6 + $0xe8] sm:$0xff] }
  0x21   :  { %169 = vmatpush.msra.mxu0 %v140_v18  ;;  %189 = vmatpush.msra.mxu1 %v141_v19  ;;  %v130_v32 = vld [vmem:[#allocation6 + $0xf0] sm:$0xff]  ;;  %v139_v33 = vld [vmem:[#allocation6 + $0x138] sm:$0xff]  ;;  %v124_v34 = vld [vmem:[#allocation6 + $0xc0] sm:$0xff]  ;;  %v530_v18 = vlaneseq }
  0x22   :  { %209 = vmatpush.msra.mxu2 %v142_v20  ;;  %227 = vmatpush.msra.mxu3 %v151_v21  ;;  %v125_v35 = vld [vmem:[#allocation6 + $0xc8] sm:$0xff]  ;;  %v126_v36 = vld [vmem:[#allocation6 + $0xd0] sm:$0xff]  ;;  %v135_v37 = vld [vmem:[#allocation6 + $0x118] sm:$0xff] }
  0x23   :  { %170 = vmatpush.msra.mxu0 %v136_v22  ;;  %190 = vmatpush.msra.mxu1 %v137_v23  ;;  %v120_v38 = vld [vmem:[#allocation6 + $0xa0] sm:$0xff]  ;;  %v121_v39 = vld [vmem:[#allocation6 + $0xa8] sm:$0xff]  ;;  %v122_v40 = vld [vmem:[#allocation6 + $0xb0] sm:$0xff]  ;;  %v1784_v20 = vand.u32 127, %v530_v18 }
  0x24   :  { %210 = vmatpush.msra.mxu2 %v138_v24  ;;  %228 = vmatpush.msra.mxu3 %v147_v25  ;;  %v131_v41 = vld [vmem:[#allocation6 + $0xf8] sm:$0xff]  ;;  %v116_v42 = vld [vmem:[#allocation6 + $0x80] sm:$0xff]  ;;  %v117_v43 = vld [vmem:[#allocation6 + $0x88] sm:$0xff] }
  0x25   :  { %171 = vmatpush.msra.mxu0 %v132_v26  ;;  %191 = vmatpush.msra.mxu1 %v133_v27  ;;  %v118_v44 = vld [vmem:[#allocation6 + $0x90] sm:$0xff]  ;;  %v127_v45 = vld [vmem:[#allocation6 + $0xd8] sm:$0xff]  ;;  %v112_v46 = vld [vmem:[#allocation6 + $0x60] sm:$0xff]  ;;  %vm886_vm1 = vcmp.lt.s32.totalorder %v1784_v20, 113  ;;  %vm919_vm2 = vcmp.lt.s32.totalorder %v1784_v20, 112  ;;  %vm820_vm3 = vcmp.lt.s32.totalorder %v1784_v20, 1 }
  0x26   :  { %211 = vmatpush.msra.mxu2 %v134_v28  ;;  %229 = vmatpush.msra.mxu3 %v143_v29  ;;  %v113_v47 = vld [vmem:[#allocation6 + $0x68] sm:$0xff]  ;;  %v114_v48 = vld [vmem:[#allocation6 + $0x70] sm:$0xff]  ;;  %v123_v49 = vld [vmem:[#allocation6 + $0xb8] sm:$0xff]  ;;  %vm787_vm5 = vcmp.lt.s32.totalorder %v1784_v20, 15  ;;  %vm853_vm6 = vcmp.lt.s32.totalorder %v1784_v20, 127 }
  0x27   :  { %172 = vmatpush.msra.mxu0 %v128_v30  ;;  %192 = vmatpush.msra.mxu1 %v129_v31  ;;  %v108_v50 = vld [vmem:[#allocation6 + $0x40] sm:$0xff]  ;;  %v109_v51 = vld [vmem:[#allocation6 + $0x48] sm:$0xff]  ;;  %v110_v52 = vld [vmem:[#allocation6 + $0x50] sm:$0xff] }
  0x28   :  { %212 = vmatpush.msra.mxu2 %v130_v32  ;;  %230 = vmatpush.msra.mxu3 %v139_v33  ;;  %v119_v53 = vld [vmem:[#allocation6 + $0x98] sm:$0xff]  ;;  %v104_v54 = vld [vmem:[#allocation6 + $0x20] sm:$0xff]  ;;  %v105_v55 = vld [vmem:[#allocation6 + $0x28] sm:$0xff] }
  0x29   :  { %173 = vmatpush.msra.mxu0 %v124_v34  ;;  %193 = vmatpush.msra.mxu1 %v125_v35  ;;  %v106_v56 = vld [vmem:[#allocation6 + $0x30] sm:$0xff]  ;;  %v115_v57 = vld [vmem:[#allocation6 + $0x78] sm:$0xff]  ;;  %v100_v58 = vld [vmem:[#allocation6] sm:$0xff] }
  0x2a   :  { %213 = vmatpush.msra.mxu2 %v126_v36  ;;  %231 = vmatpush.msra.mxu3 %v135_v37  ;;  %v101_v59 = vld [vmem:[#allocation6 + $0x8] sm:$0xff]  ;;  %v102_v60 = vld [vmem:[#allocation6 + $0x10] sm:$0xff]  ;;  %v99_v61 = vld [vmem:[%s2642_s0] sm:$0xff]  ;;  %s1620_s0 = smov 112  }
  0x2b   :  { %174 = vmatpush.msra.mxu0 %v120_v38  ;;  %194 = vmatpush.msra.mxu1 %v121_v39  ;;  %v111_v62 = vld [vmem:[#allocation6 + $0x58] sm:$0xff]  ;;  %v1693_v63 = vld [vmem:[%s2648_s6] sm:$0xff]  ;;  %v1697_v3 = vld [vmem:[#allocation3 + $0x8] sm:$0xff] }
  0x2c   :  { %214 = vmatpush.msra.mxu2 %v122_v40  ;;  %232 = vmatpush.msra.mxu3 %v131_v41  ;;  %v107_v0 = vld [vmem:[#allocation6 + $0x38] sm:$0xff]  ;;  %v1695_v2 = vld [vmem:[#allocation3] sm:$0xff]  ;;  %v1704_v7 = vld [vmem:[#allocation3 + $0x10] sm:$0xff] }
  0x2d   :  { %175 = vmatpush.msra.mxu0 %v116_v42  ;;  %195 = vmatpush.msra.mxu1 %v117_v43  ;;  %v103_v4 = vld [vmem:[#allocation6 + $0x18] sm:$0xff]  ;;  %v98_v6 = vld [vmem:[#allocation8] sm:$0xff] }
  0x2e   :  { %215 = vmatpush.msra.mxu2 %v118_v44  ;;  %233 = vmatpush.msra.mxu3 %v127_v45  ;;  %v1723_v11 = vld [vmem:[#allocation3 + $0x18] sm:$0xff] }
  0x2f   :  { %176 = vmatpush.msra.mxu0 %v112_v46  ;;  %196 = vmatpush.msra.mxu1 %v113_v47 }
  0x30   :  { %216 = vmatpush.msra.mxu2 %v114_v48  ;;  %234 = vmatpush.msra.mxu3 %v123_v49 }
  0x31   :  { %177 = vmatpush.msra.mxu0 %v108_v50  ;;  %197 = vmatpush.msra.mxu1 %v109_v51 }
  0x32   :  { %217 = vmatpush.msra.mxu2 %v110_v52  ;;  %235 = vmatpush.msra.mxu3 %v119_v53 }
  0x33   :  { %178 = vmatpush.msra.mxu0 %v104_v54  ;;  %198 = vmatpush.msra.mxu1 %v105_v55 }
  0x34   :  { %218 = vmatpush.msra.mxu2 %v106_v56  ;;  %236 = vmatpush.msra.mxu3 %v115_v57 }
  0x35   :  { %179 = vmatpush.msra.mxu0 %v100_v58  ;;  %199 = vmatpush.msra.mxu1 %v101_v59 }
  0x36   :  { %219 = vmatpush.msra.mxu2 %v102_v60  ;;  %180 = vmatmul.f32.vlgmr.msra.gmra.mxu0 %v99_v61 }
  0x37   :  { %200 = vmatmul.f32.vlgmr.msra.gmra.mxu1 %v99_v61  ;;  %220 = vmatmul.f32.vlgmr.msra.gmra.mxu2 %v99_v61 }
  0x38   :  { %237 = vmatpush.msra.mxu3 %v111_v62  ;;  %266 = vperm.xlu0 %1437, %v1693_v63  }
  0x39   :  { %1438 = vset.pattern.permute.xlu1 %v1619_v5  ;;  %287 = vmatpush.msrb.mxu0 %v1695_v2 }
  0x3a   :  { %238 = vmatpush.msra.mxu3 %v107_v0  ;;  %358 = vperm.xlu1 %1438, %v1693_v63  }
  0x3b   :  { %307 = vmatpush.msrb.mxu1 %v1697_v3  ;;  %327 = vmatpush.msrb.mxu2 %v1704_v7 }
  0x3c   :  { %239 = vmatpush.msra.mxu3 %v103_v4 }
  0x3d   :  { %240 = vmatmul.f32.vlgmr.msra.gmra.mxu3 %v99_v61 }
  0x40   :  { %361 = vrot.lane.b32.xlu0 %v98_v6, %s1620_s0 }
  0xaa   :  { %v267_v14 = vpop.permute.xlu0 %266 }
  0xac   :  { %v1780_v16 = vpop.permute.xlu1 %358 }
  0xb2   :  { %v362_v17 = vpop.permute.xlu0 %361 }
  0xb3   :  { %v1707_v8 = vpop.f32.mrf.mxu0 }
  0xb4   :  { %v1709_v9 = vpop.f32.mrf.mxu1  ;;  %288 = vmatpush.msrb.mxu0 %v1707_v8  ;;  %870 = vrot.lane.b32.xlu1 %v1707_v8, %s1621_s27 }
  0xb5   :  { %940 = vrot.lane.b32.xlu2 %v1709_v9, %s1622_s28  ;;  %308 = vmatpush.msrb.mxu1 %v1709_v9 }
  0xb6   :  { %907 = vrot.lane.b32.xlu0 %v1709_v9, %s1620_s0  ;;  %1384 = vmatmul.msk.f32.vlgmr.msrb.gmra.mxu0 %vm269_vm0, %v98_v6 }
  0xb7   :  { %1385 = vmatmul.msk.f32.vlgmr.msrb.gmra.mxu1 %vm269_vm0, %v98_v6 }
  0xba   :  { %v1721_v10 = vpop.f32.mrf.mxu2 }
  0xbb   :  { %328 = vmatpush.msrb.mxu2 %v1721_v10 }
  0xbc   :  { %1386 = vmatmul.msk.f32.vlgmr.msrb.gmra.mxu2 %vm269_vm0, %v98_v6  ;;  %841 = vrot.lane.b32.xlu1 %v1709_v9, %s1623_s29 }
  0xbd   :  { %903 = vrot.lane.b32.xlu2 %v1707_v8, %s1620_s0  ;;  %347 = vmatpush.msra.mxu2 %v1723_v11 }
  0xbe   :  { %837 = vrot.lane.b32.xlu0 %v1707_v8, %s1623_s29 }
  0xc0   :  { %v1734_v12 = vpop.f32.mrf.mxu3 }
  0xc1   :  { %2660 = vst [vmem:[#allocation17_spill] sm:$0xff] %v1734_v12  ;;  %348 = vmatpush.msra.mxu2 %v1734_v12 }
  0xc4   :  { %1387 = vmatmul.msk.f32.vlgmr.msra.gmra.mxu2 %vm269_vm0, %v98_v6  ;;  %911 = vrot.lane.b32.xlu1 %v1721_v10, %s1620_s0 }
  0xc5   :  { %874 = vrot.lane.b32.xlu2 %v1709_v9, %s1621_s27 }
  0xc6   :  { %808 = vrot.lane.b32.xlu0 %v1709_v9, %s1624_s30 }
  0xcc   :  { %882 = vrot.lane.b32.xlu1 %v1734_v12, %s1621_s27 }
  0xcd   :  { %804 = vrot.lane.b32.xlu2 %v1707_v8, %s1624_s30 }
  0xce   :  { %775 = vrot.lane.b32.xlu0 %v1709_v9, %s1625_s8 }
  0xd4   :  { %812 = vrot.lane.b32.xlu1 %v1721_v10, %s1624_s30 }
  0xd5   :  { %771 = vrot.lane.b32.xlu2 %v1707_v8, %s1625_s8 }
  0xd6   :  { %738 = vrot.lane.b32.xlu0 %v1707_v8, %s1626_s9 }
  0xdc   :  { %779 = vrot.lane.b32.xlu1 %v1721_v10, %s1625_s8 }
  0xdd   :  { %742 = vrot.lane.b32.xlu2 %v1709_v9, %s1626_s9 }
  0xde   :  { %944 = vrot.lane.b32.xlu0 %v1721_v10, %s1622_s28 }
  0xe5   :  { %915 = vrot.lane.b32.xlu2 %v1734_v12, %s1620_s0 }
  0xe6   :  { %878 = vrot.lane.b32.xlu0 %v1721_v10, %s1621_s27 }
  0xed   :  { %845 = vrot.lane.b32.xlu2 %v1721_v10, %s1623_s29 }
  0xee   :  { %849 = vrot.lane.b32.xlu0 %v1734_v12, %s1623_s29 }
  0xf5   :  { %816 = vrot.lane.b32.xlu2 %v1734_v12, %s1624_s30 }
  0xf6   :  { %948 = vrot.lane.b32.xlu0 %v1734_v12, %s1622_s28 }
  0xfd   :  { %783 = vrot.lane.b32.xlu2 %v1734_v12, %s1625_s8 }
  0xfe   :  { %750 = vrot.lane.b32.xlu0 %v1734_v12, %s1626_s9 }
 0x10f   :  { %v1778_v13 = vpop.permute.xlu2 %940 }
 0x117   :  { %v904_v15 = vpop.permute.xlu2 %903 }
 0x11f   :  { %v1782_v19 = vpop.permute.xlu2 %874 }
 0x126   :  { %v871_v21 = vpop.permute.xlu1 %870 }
 0x127   :  { %v805_v22 = vpop.permute.xlu2 %804  ;;  %v1791_v23 = vsel %vm886_vm1, %v871_v21, %v1782_v19 }
 0x128   :  { %v1793_v24 = vpop.permute.xlu0 %907 }
 0x129   :  { %v1798_v25 = vsel %vm919_vm2, %v904_v15, %v1793_v24 }
 0x12e   :  { %v1800_v26 = vpop.permute.xlu1 %841 }
 0x12f   :  { %v1802_v27 = vpop.permute.xlu2 %771 }
 0x130   :  { %v1804_v28 = vpop.permute.xlu0 %837 }
 0x133   :  { %v290_v29 = vpop.f32.mrf.mxu0 }
 0x134   :  { %v291_v30 = vadd.f32 %v290_v29, %v267_v14  ;;  %v310_v31 = vpop.f32.mrf.mxu1 }
 0x135   :  { %v311_v32 = vadd.f32 %v310_v31, %v267_v14 }
 0x136   :  { %v353_v33 = vmax.f32 %v291_v30, 0.0  ;;  %v1806_v34 = vpop.permute.xlu1 %911 }
 0x137   :  { %v354_v35 = vmax.f32 %v311_v32, 0.0  ;;  %v1809_v36 = vpop.permute.xlu2 %742 }
 0x138   :  { %v809_v37 = vpop.permute.xlu0 %808  ;;  %381 = vmatpush.msra.mxu0 %v353_v33 }
 0x139   :  { %v1813_v38 = vsel %vm820_vm3, %v805_v22, %v809_v37  ;;  %401 = vmatpush.msra.mxu1 %v354_v35  ;;  %1388 = vmatmul.msk.f32.vlgmr.msra.gmra.mxu0 %vm363_vm4, %v362_v17 }
 0x13a   :  { %1389 = vmatmul.msk.f32.vlgmr.msra.gmra.mxu1 %vm363_vm4, %v362_v17 }
 0x13e   :  { %v883_v39 = vpop.permute.xlu1 %882 }
 0x13f   :  { %v916_v40 = vpop.permute.xlu2 %915  ;;  %v330_v41 = vpop.f32.mrf.mxu2  ;;  %v1820_v42 = vsel %vm886_vm1, %v883_v39, %v871_v21 }
 0x140   :  { %v1824_v43 = vsel %vm919_vm2, %v916_v40, %v904_v15  ;;  %v331_v44 = vadd.f32 %v330_v41, %v267_v14  ;;  %v1826_v45 = vpop.permute.xlu0 %775  ;;  %v1831_v46 = vsel %vm919_vm2, %v1806_v34, %v916_v40 }
 0x141   :  { %v1837_v47 = vsel %vm787_vm5, %v1802_v27, %v1826_v45 }
 0x142   :  { %v355_v48 = vmax.f32 %v331_v44, 0.0 }
 0x144   :  { %421 = vmatpush.msrb.mxu2 %v355_v48 }
 0x145   :  { %1390 = vmatmul.msk.f32.vlgmr.msrb.gmra.mxu2 %vm363_vm4, %v362_v17 }
 0x146   :  { %v813_v49 = vpop.permute.xlu1 %812 }
 0x147   :  { %v846_v50 = vpop.permute.xlu2 %845  ;;  %v350_v51 = vpop.f32.mrf.mxu2  ;;  %v1843_v52 = vsel %vm820_vm3, %v809_v37, %v813_v49 }
 0x148   :  { %v1848_v53 = vsel %vm853_vm6, %v1800_v26, %v846_v50  ;;  %v351_v54 = vadd.f32 %v350_v51, %v267_v14  ;;  %v1850_v55 = vpop.permute.xlu0 %738 }
 0x14a   :  { %v356_v56 = vmax.f32 %v351_v54, 0.0 }
 0x14c   :  { %441 = vmatpush.msrb.mxu3 %v356_v56 }
 0x14d   :  { %1391 = vmatmul.msk.f32.vlgmr.msrb.gmra.mxu3 %vm363_vm4, %v362_v17 }
 0x14f   :  { %v817_v57 = vpop.permute.xlu2 %816 }
 0x150   :  { %v1855_v58 = vsel %vm820_vm3, %v813_v49, %v817_v57  ;;  %v1859_v59 = vsel %vm820_vm3, %v817_v57, %v805_v22  ;;  %v1861_v60 = vpop.permute.xlu0 %944 }
 0x151   :  { %2661 = vst [vmem:[#allocation18_spill] sm:$0xff] %v1855_v58 }
 0x158   :  { %v1863_v61 = vpop.permute.xlu0 %878 }
 0x159   :  { %v1868_v62 = vsel %vm886_vm1, %v1863_v61, %v883_v39 }
 0x160   :  { %v850_v0 = vpop.permute.xlu0 %849 }
 0x161   :  { %v1872_v1 = vsel %vm853_vm6, %v846_v50, %v850_v0  ;;  %v1877_v4 = vsel %vm853_vm6, %v850_v0, %v1804_v28 }
 0x162   :  { %2662 = vst [vmem:[#allocation19_spill] sm:$0xff] %v1877_v4 }
 0x1b6   :  { %v383_v5 = vpop.f32.mrf.mxu0 }
 0x1b7   :  { %v384_v6 = vadd.f32 %v383_v5, %v1780_v16  ;;  %v403_v14 = vpop.f32.mrf.mxu1 }
 0x1b8   :  { %v404_v15 = vadd.f32 %v403_v14, %v1780_v16 }
 0x1b9   :  { %v1392_v17 = vmul.f32 -1.442695, %v384_v6 }
 0x1ba   :  { %v1393_v18 = vmul.f32 -1.442695, %v404_v15 }
 0x1bb   :  { %1442 = vpow2.f32 %v1392_v17 }
 0x1bc   :  { %1444 = vpow2.f32 %v1393_v18 }
 0x1c1   :  { %v1443_v21 = vpop.eup %1442 }
 0x1c2   :  { %v1445_v22 = vpop.eup %1444  ;;  %v458_v29 = vadd.f32 1.0, %v1443_v21 }
 0x1c3   :  { %v459_v30 = vadd.f32 1.0, %v1445_v22 }
 0x1c4   :  { %1446 = vrcp.f32 %v458_v29  ;;  %v473_v44 = vand.u32 2147483648, %v458_v29  ;;  %v471_v50 = vand.u32 2147483647, %v458_v29  ;;  %vm467_vm9 = vweird.f32 %v458_v29 }
 0x1c5   :  { %1448 = vrcp.f32 %v459_v30  ;;  %v488_v51 = vand.u32 2147483648, %v459_v30  ;;  %v486_v56 = vand.u32 2147483647, %v459_v30  ;;  %vm482_vm11 = vweird.f32 %v459_v30 }
 0x1c6   :  { %v474_v6 = vor.u32 1.1754944e-38, %v473_v44  ;;  %vm472_vm12 = vcmp.eq.f32.partialorder %v471_v50, 8.507059e+37 }
 0x1c7   :  { %v489_v18 = vor.u32 1.1754944e-38, %v488_v51  ;;  %vm487_vm14 = vcmp.eq.f32.partialorder %v486_v56, 8.507059e+37 }
 0x1c8   :  { %v423_v31 = vpop.f32.mrf.mxu2 }
 0x1c9   :  { %v424_v32 = vadd.f32 %v423_v31, %v1780_v16 }
 0x1ca   :  { %v1447_v33 = vpop.eup %1446 }
 0x1cb   :  { %v1449_v35 = vpop.eup %1448  ;;  %v463_v37 = vmul.f32 %v1447_v33, %v458_v29  ;;  %v1394_v39 = vmul.f32 -1.442695, %v424_v32  ;;  %vm468_vm7 = vweird.f32 %v1447_v33 }
 0x1cc   :  { %v478_v40 = vmul.f32 %v1449_v35, %v459_v30  ;;  %vm483_vm8 = vweird.f32 %v1449_v35  ;;  %vm469_vm10 = vmor %vm467_vm9, %vm468_vm7 }
 0x1cd   :  { %v464_v41 = vsub.f32 1.0, %v463_v37  ;;  %1450 = vpow2.f32 %v1394_v39  ;;  %vm484_vm13 = vmor %vm482_vm11, %vm483_vm8 }
 0x1ce   :  { %v479_v48 = vsub.f32 1.0, %v478_v40 }
 0x1cf   :  { %v465_v49 = vmul.f32 %v1447_v33, %v464_v41 }
 0x1d0   :  { %v480_v54 = vmul.f32 %v1449_v35, %v479_v48  ;;  %v443_v57 = vpop.f32.mrf.mxu3 }
 0x1d1   :  { %v466_v0 = vadd.f32 %v1447_v33, %v465_v49  ;;  %v444_v5 = vadd.f32 %v443_v57, %v1780_v16 }
 0x1d2   :  { %v481_v14 = vadd.f32 %v1449_v35, %v480_v54 }
 0x1d3   :  { %v1451_v15 = vpop.eup %1450  ;;  %v470_v17 = vsel %vm469_vm10, %v1447_v33, %v466_v0  ;;  %v1395_v29 = vmul.f32 -1.442695, %v444_v5 }
 0x1d4   :  { %v475_v21 = vsel %vm472_vm12, %v474_v6, %v470_v17  ;;  %v485_v22 = vsel %vm484_vm13, %v1449_v35, %v481_v14  ;;  %v460_v31 = vadd.f32 1.0, %v1451_v15 }
 0x1d5   :  { %v1884_v32 = vmul.f32 %v475_v21, %v1695_v2  ;;  %v490_v37 = vsel %vm487_vm14, %v489_v18, %v485_v22  ;;  %v1967_v22 = vpop.permute.xlu0 %948 }
 0x1d6   :  { %v1887_v16 = vmul.f32 %v490_v37, %v1697_v3  ;;  %1452 = vrcp.f32 %v460_v31  ;;  %v503_v41 = vand.u32 2147483648, %v460_v31  ;;  %vm497_vm4 = vweird.f32 %v460_v31 }
 0x1d7   :  { %872 = vrot.lane.b32.xlu0 %v1884_v32, %s1621_s27  ;;  %1454 = vpow2.f32 %v1395_v29  ;;  %v501_v44 = vand.u32 2147483647, %v460_v31  ;;  %v1977_v29 = vpop.permute.xlu1 %779 }
 0x1d8   :  { %909 = vrot.lane.b32.xlu2 %v1887_v16, %s1620_s0  ;;  %942 = vrot.lane.b32.xlu1 %v1887_v16, %s1622_s28  ;;  %v504_v49 = vor.u32 1.1754944e-38, %v503_v41  ;;  %v2651_v41 = vmov 0.0  }
 0x1d9   :  { %vm502_vm8 = vcmp.eq.f32.partialorder %v501_v44, 8.507059e+37 }
 0x1dc   :  { %v1453_v30 = vpop.eup %1452 }
 0x1dd   :  { %v493_v33 = vmul.f32 %v1453_v30, %v460_v31  ;;  %v1455_v2 = vpop.eup %1454  ;;  %vm498_vm15 = vweird.f32 %v1453_v30  ;;  %v1975_v37 = vpop.permute.xlu0 %750 }
 0x1de   :  { %v461_v39 = vadd.f32 1.0, %v1455_v2  ;;  %vm499_vm7 = vmor %vm497_vm4, %vm498_vm15  ;;  %vm952_vm15 = vcmp.lt.s32.totalorder %v1784_v20, 111 }
 0x1df   :  { %v494_v35 = vsub.f32 1.0, %v493_v33  ;;  %843 = vrot.lane.b32.xlu0 %v1887_v16, %s1623_s29  ;;  %v532_v33 = vadd.s32 128, %v1784_v20 }
 0x1e0   :  { %839 = vrot.lane.b32.xlu2 %v1884_v32, %s1623_s29  ;;  %905 = vrot.lane.b32.xlu1 %v1884_v32, %s1620_s0  ;;  %1456 = vrcp.f32 %v461_v39  ;;  %v518_v5 = vand.u32 2147483648, %v461_v39  ;;  %vm512_vm10 = vweird.f32 %v461_v39  ;;  %v516_v6 = vand.u32 2147483647, %v461_v39 }
 0x1e1   :  { %v495_v3 = vmul.f32 %v1453_v30, %v494_v35  ;;  %v594_v35 = vand.u32 255, %v532_v33 }
 0x1e2   :  { %v519_v15 = vor.u32 1.1754944e-38, %v518_v5  ;;  %vm517_vm12 = vcmp.eq.f32.partialorder %v516_v6, 8.507059e+37  ;;  %v539_v5 = vand.u32 15, %v1784_v20 }
 0x1e3   :  { %v496_v40 = vadd.f32 %v1453_v30, %v495_v3  ;;  %vm644_vm13 = vcmp.lt.s32.totalorder %v594_v35, 240 }
 0x1e4   :  { %v1992_v44 = vsel %vm644_vm13, 1.0, %v2651_v41  ;;  %vm655_vm4 = vcmp.gt.s32.totalorder %v539_v5, 0 }
 0x1e5   :  { %v500_v48 = vsel %vm499_vm7, %v1453_v30, %v496_v40  ;;  %v546_v40 = vand.u32 15, %v532_v33  ;;  %2664 = vst [vmem:[#allocation21_spill] sm:$0xff] %v1992_v44  ;;  %v2027_v35 = vsel %vm655_vm4, 1.0, %v2651_v41  ;;  %vm667_vm7 = vcmp.lt.s32.totalorder %v539_v5, 15 }
 0x1e6   :  { %v505_v50 = vsel %vm502_vm8, %v504_v49, %v500_v48  ;;  %v1457_v51 = vpop.eup %1456 }
 0x1e7   :  { %773 = vrot.lane.b32.xlu0 %v1884_v32, %s1625_s8  ;;  %v1908_v54 = vmul.f32 %v505_v50, %v1704_v7  ;;  %v508_v56 = vmul.f32 %v1457_v51, %v461_v39  ;;  %vm513_vm9 = vweird.f32 %v1457_v51  ;;  %vm668_vm14 = vcmp.lt.s32.totalorder %v546_v40, 15 }
 0x1e8   :  { %810 = vrot.lane.b32.xlu2 %v1887_v16, %s1624_s30  ;;  %876 = vrot.lane.b32.xlu1 %v1887_v16, %s1621_s27  ;;  %vm514_vm11 = vmor %vm512_vm10, %vm513_vm9  ;;  %v1995_v48 = vsel %vm668_vm14, 1.0, %v2651_v41  ;;  %vm656_vm8 = vcmp.gt.s32.totalorder %v546_v40, 0  ;;  %v2667_v40 = vmov 0.0   ;;  %vm754_vm9 = vcmp.lt.s32.totalorder %v1784_v20, 16 }
 0x1e9   :  { %v509_v57 = vsub.f32 1.0, %v508_v56  ;;  %v2001_v50 = vmul.f32 %v1995_v48, %v1992_v44 }
 0x1eb   :  { %v510_v0 = vmul.f32 %v1457_v51, %v509_v57  ;;  %2665 = vst [vmem:[#allocation22_spill] sm:$0xff] %v2001_v50  ;;  %v955_v57 = vsel %vm952_vm15, %v1778_v13, %v1861_v60 }
 0x1ed   :  { %v511_v7 = vadd.f32 %v1457_v51, %v510_v0 }
 0x1ef   :  { %913 = vrot.lane.b32.xlu0 %v1908_v54, %s1620_s0  ;;  %v515_v14 = vsel %vm514_vm11, %v1457_v51, %v511_v7  ;;  %vm721_vm11 = vcmp.lt.s32.totalorder %v1784_v20, 17 }
 0x1f0   :  { %711 = vrot.lane.b32.xlu2 %v1887_v16, %s1627_s10  ;;  %806 = vrot.lane.b32.xlu1 %v1884_v32, %s1624_s30  ;;  %v520_v17 = vsel %vm517_vm12, %v519_v15, %v515_v14  ;;  %v962_v14 = vmul.f32 %v955_v57, %v2001_v50 }
 0x1f1   :  { %v1929_v18 = vmul.f32 %v520_v17, %v1723_v11  ;;  %v1961_v11 = vpop.permute.xlu2 %783 }
 0x1f3   :  { %2663 = vst [vmem:[#allocation20_spill] sm:$0xff] %v1929_v18 }
 0x1f7   :  { %814 = vrot.lane.b32.xlu0 %v1908_v54, %s1624_s30 }
 0x1f8   :  { %946 = vrot.lane.b32.xlu2 %v1908_v54, %s1622_s28  ;;  %777 = vrot.lane.b32.xlu1 %v1887_v16, %s1625_s8 }
 0x1ff   :  { %715 = vrot.lane.b32.xlu0 %v1908_v54, %s1627_s10 }
 0x200   :  { %880 = vrot.lane.b32.xlu2 %v1908_v54, %s1621_s27  ;;  %740 = vrot.lane.b32.xlu1 %v1884_v32, %s1626_s9 }
 0x207   :  { %884 = vrot.lane.b32.xlu0 %v1929_v18, %s1621_s27 }
 0x208   :  { %781 = vrot.lane.b32.xlu2 %v1908_v54, %s1625_s8  ;;  %744 = vrot.lane.b32.xlu1 %v1887_v16, %s1626_s9 }
 0x20f   :  { %746 = vrot.lane.b32.xlu0 %v1721_v10, %s1626_s9 }
 0x210   :  { %748 = vrot.lane.b32.xlu2 %v1908_v54, %s1626_s9  ;;  %707 = vrot.lane.b32.xlu1 %v1884_v32, %s1627_s10 }
 0x217   :  { %785 = vrot.lane.b32.xlu0 %v1929_v18, %s1625_s8 }
 0x218   :  { %851 = vrot.lane.b32.xlu2 %v1929_v18, %s1623_s29  ;;  %847 = vrot.lane.b32.xlu1 %v1908_v54, %s1623_s29 }
 0x21f   :  { %713 = vrot.lane.b32.xlu0 %v1721_v10, %s1627_s10 }
 0x220   :  { %709 = vrot.lane.b32.xlu2 %v1709_v9, %s1627_s10  ;;  %917 = vrot.lane.b32.xlu1 %v1929_v18, %s1620_s0 }
 0x227   :  { %936 = vrot.lane.b32.xlu0 %v1707_v8, %s1622_s28 }
 0x228   :  { %752 = vrot.lane.b32.xlu2 %v1929_v18, %s1626_s9  ;;  %705 = vrot.lane.b32.xlu1 %v1707_v8, %s1627_s10 }
 0x230   :  { %938 = vrot.lane.b32.xlu2 %v1884_v32, %s1622_s28  ;;  %818 = vrot.lane.b32.xlu1 %v1929_v18, %s1624_s30 }
 0x232   :  { %v910_v21 = vpop.permute.xlu2 %909 }
 0x238   :  { %950 = vrot.lane.b32.xlu1 %v1929_v18, %s1622_s28 }
 0x23a   :  { %v1971_v31 = vpop.permute.xlu2 %839 }
 0x240   :  { %719 = vrot.lane.b32.xlu1 %v1929_v18, %s1627_s10 }
 0x242   :  { %v1979_v30 = vpop.permute.xlu2 %810 }
 0x248   :  { %717 = vrot.lane.b32.xlu1 %v1734_v12, %s1627_s10 }
 0x249   :  { %v1984_v2 = vpop.permute.xlu0 %872 }
 0x24a   :  { %v1986_v3 = vpop.permute.xlu1 %942  ;;  %v1988_v39 = vpop.permute.xlu2 %711 }
 0x251   :  { %v1997_v49 = vpop.permute.xlu0 %843 }
 0x252   :  { %v2003_v51 = vpop.permute.xlu2 %946  ;;  %v2005_v56 = vpop.permute.xlu1 %905 }
 0x253   :  { %v956_v0 = vsel %vm952_vm15, %v1986_v3, %v2003_v51  ;;  %v925_v7 = vsel %vm919_vm2, %v2005_v56, %v910_v21 }
 0x254   :  { %v966_v6 = vmul.f32 %v956_v0, %v2001_v50  ;;  %976 = vmatpush.msrb.mxu0 %v925_v7  ;;  %v895_v7 = vmul.f32 %v2027_v35, %v1791_v23  ;;  %v922_v23 = vsel %vm919_vm2, %v1793_v24, %v1806_v34 }
 0x255   :  { %v929_v24 = vmul.f32 %v1992_v44, %v922_v23 }
 0x256   :  { %977 = vmatpush.msrb.mxu0 %v1798_v25  ;;  %1050 = vmatpush.msra.mxu3 %v966_v6  ;;  %v859_v25 = vsel %vm853_vm6, %v1971_v31, %v1997_v49  ;;  %v2040_v6 = vsel %vm667_vm7, 1.0, %v2651_v41 }
 0x257   :  { %v866_v5 = vmul.f32 %v2040_v6, %v859_v25  ;;  %v2063_v25 = vsel %vm656_vm8, 1.0, %v2667_v40 }
 0x258   :  { %1051 = vmatpush.msra.mxu3 %v962_v14  ;;  %v858_v14 = vsel %vm853_vm6, %v1804_v28, %v1800_v26  ;;  %v2071_v34 = vmul.f32 %v2063_v25, %v1992_v44 }
 0x259   :  { %v2022_v15 = vpop.permute.xlu0 %773  ;;  %v862_v50 = vmul.f32 %v2040_v6, %v858_v14 }
 0x25a   :  { %v2024_v17 = vpop.permute.xlu2 %880  ;;  %v877_v33 = vpop.permute.xlu1 %876  ;;  %2668 = vst [vmem:[#allocation24_spill] sm:$0xff] %v2071_v34 }
 0x25b   :  { %v892_v0 = vsel %vm886_vm1, %v1984_v2, %v877_v33 }
 0x25c   :  { %v899_v57 = vmul.f32 %v2027_v35, %v892_v0 }
 0x25e   :  { %978 = vmatpush.msrb.mxu0 %v899_v57 }
 0x260   :  { %979 = vmatpush.msrb.mxu0 %v895_v7  ;;  %v890_v7 = vsel %vm886_vm1, %v877_v33, %v2024_v17 }
 0x261   :  { %v2047_v0 = vpop.permute.xlu0 %913  ;;  %v900_v14 = vmul.f32 %v890_v7, %v2071_v34 }
 0x262   :  { %v2054_v57 = vpop.permute.xlu2 %781  ;;  %v2056_v41 = vpop.permute.xlu1 %806  ;;  %980 = vmatpush.msrb.mxu0 %v866_v5  ;;  %v923_v26 = vsel %vm919_vm2, %v910_v21, %v2047_v0  ;;  %v889_v21 = vsel %vm886_vm1, %v1782_v19, %v1863_v61 }
 0x263   :  { %2666 = vst [vmem:[#allocation23_spill] sm:$0xff] %v2054_v57  ;;  %v933_v28 = vmul.f32 %v1992_v44, %v923_v26 }
 0x264   :  { %981 = vmatpush.msrb.mxu0 %v862_v50  ;;  %v896_v50 = vmul.f32 %v889_v21, %v2071_v34 }
 0x265   :  { %1016 = vmatpush.msra.mxu2 %v933_v28 }
 0x266   :  { %982 = vmatpush.msrb.mxu0 %v1884_v32 }
 0x267   :  { %1017 = vmatpush.msra.mxu2 %v929_v24 }
 0x268   :  { %983 = vmatpush.msrb.mxu0 %v1707_v8 }
 0x269   :  { %1018 = vmatpush.msra.mxu2 %v900_v14  ;;  %v2081_v33 = vpop.permute.xlu0 %814 }
 0x26a   :  { %2669 = vst [vmem:[#allocation25_spill] sm:$0xff] %v2081_v33  ;;  %v2083_v5 = vpop.permute.xlu2 %748  ;;  %v778_v23 = vpop.permute.xlu1 %777  ;;  %v2089_v19 = vsel %vm820_vm3, %v1979_v30, %v2081_v33 }
 0x26b   :  { %v2094_v61 = vsel %vm787_vm5, %v778_v23, %v2054_v57  ;;  %1019 = vmatpush.msra.mxu2 %v896_v50 }
 0x271   :  { %v2096_v8 = vpop.permute.xlu0 %715 }
 0x272   :  { %v2098_v32 = vpop.permute.xlu2 %851  ;;  %v2100_v26 = vpop.permute.xlu1 %740 }
 0x273   :  { %v2106_v28 = vsel %vm853_vm6, %v2098_v32, %v1971_v31 }
 0x274   :  { %2670 = vst [vmem:[#allocation26_spill] sm:$0xff] %v2106_v28  ;;  %v2142_v28 = vld [vmem:[#allocation9 + $0x8] sm:$0xff] }
 0x275   :  { %1409 = vmatmul.msk.f32.vlgmr.msra.gmra.mxu3 %vm269_vm0, %v2142_v28 }
 0x279   :  { %v2108_v7 = vpop.permute.xlu0 %884 }
 0x27a   :  { %v2110_v24 = vpop.permute.xlu2 %709  ;;  %v2112_v21 = vpop.permute.xlu1 %744 }
 0x281   :  { %v2114_v14 = vpop.permute.xlu0 %746 }
 0x282   :  { %v2117_v50 = vpop.permute.xlu2 %752  ;;  %v2119_v34 = vpop.permute.xlu1 %707 }
 0x283   :  { %v2125_v31 = vsel %vm754_vm9, %v2083_v5, %v2117_v50 }
 0x284   :  { %2671 = vst [vmem:[#allocation27_spill] sm:$0xff] %v2125_v31  ;;  %v863_v31 = vmul.f32 %v1995_v48, %v1848_v53  ;;  %v2156_v53 = vadd.s32 256, %v1784_v20 }
 0x289   :  { %v2127_v44 = vpop.permute.xlu0 %785 }
 0x28a   :  { %v2129_v58 = vpop.permute.xlu2 %938  ;;  %v848_v57 = vpop.permute.xlu1 %847 }
 0x28b   :  { %2672 = vst [vmem:[#allocation28_spill] sm:$0xff] %v2129_v58  ;;  %v958_v12 = vsel %vm952_vm15, %v2129_v58, %v1986_v3  ;;  %v857_v18 = vsel %vm853_vm6, %v1997_v49, %v848_v57  ;;  %v826_v3 = vsel %vm820_vm3, %v2056_v41, %v1979_v30  ;;  %v830_v30 = vmul.f32 %v2063_v25, %v1813_v38 }
 0x28c   :  { %v965_v33 = vmul.f32 %v2040_v6, %v958_v12  ;;  %v867_v4 = vmul.f32 %v1995_v48, %v857_v18  ;;  %v793_v18 = vsel %vm787_vm5, %v2022_v15, %v778_v23  ;;  %v553_v49 = vand.u32 15, %v2156_v53 }
 0x28d   :  { %v587_v23 = vand.u32 255, %v1784_v20 }
 0x28e   :  { %1010 = vmatpush.msrb.mxu1 %v965_v33  ;;  %1020 = vmatpush.msra.mxu2 %v867_v4  ;;  %v834_v4 = vmul.f32 %v2063_v25, %v826_v3  ;;  %v801_v33 = vmul.f32 %v1995_v48, %v793_v18  ;;  %vm657_vm10 = vcmp.gt.s32.totalorder %v553_v49, 0  ;;  %v760_v18 = vsel %vm754_vm9, %v2100_v26, %v2112_v21 }
 0x28f   :  { %vm669_vm12 = vcmp.lt.s32.totalorder %v553_v49, 15  ;;  %vm631_vm13 = vcmp.ge.s32.totalorder %v587_v23, 16 }
 0x290   :  { %1021 = vmatpush.msra.mxu2 %v863_v31  ;;  %v797_v31 = vmul.f32 %v1995_v48, %v1837_v47  ;;  %v888_v47 = vsel %vm886_vm1, %v2024_v17, %v2108_v7  ;;  %v2197_v17 = vsel %vm657_vm10, 1.0, %v2667_v40 }
 0x291   :  { %v2148_v58 = vpop.permute.xlu0 %713 }
 0x292   :  { %v2152_v12 = vpop.permute.xlu1 %917  ;;  %1022 = vmatpush.msra.mxu2 %v1887_v16 }
 0x294   :  { %1023 = vmatpush.msra.mxu2 %v1709_v9 }
 0x296   :  { %1024 = vmatpush.msra.mxu2 %v834_v4  ;;  %v727_v4 = vsel %vm721_vm11, %v2119_v34, %v1988_v39 }
 0x298   :  { %1025 = vmatpush.msra.mxu2 %v830_v30 }
 0x299   :  { %v2167_v16 = vpop.permute.xlu0 %936 }
 0x29a   :  { %v2171_v3 = vpop.permute.xlu1 %705  ;;  %1026 = vmatpush.msra.mxu2 %v801_v33  ;;  %v957_v9 = vsel %vm952_vm15, %v2167_v16, %v1778_v13  ;;  %v921_v13 = vsel %vm919_vm2, %v2047_v0, %v2152_v12  ;;  %v759_v0 = vsel %vm754_vm9, %v1850_v55, %v1809_v36  ;;  %v901_v33 = vmul.f32 %v2197_v17, %v888_v47  ;;  %v2223_v47 = vld [vmem:[#allocation9] sm:$0xff] }
 0x29b   :  { %v961_v38 = vmul.f32 %v2040_v6, %v957_v9  ;;  %v726_v30 = vsel %vm721_vm11, %v2171_v3, %v2110_v24  ;;  %v855_v9 = vsel %vm853_vm6, %v848_v57, %v2098_v32 }
 0x29c   :  { %1027 = vmatpush.msra.mxu2 %v797_v31  ;;  %v735_v31 = vmul.f32 %v2063_v25, %v727_v4  ;;  %v731_v49 = vmul.f32 %v2063_v25, %v726_v30  ;;  %v2229_v4 = vsel %vm631_vm13, 1.0, %v2667_v40  ;;  %v795_v30 = vsel %vm787_vm5, %v2127_v44, %v2022_v15 }
 0x29d   :  { %1011 = vmatpush.msrb.mxu1 %v961_v38  ;;  %v2216_v38 = vadd.s32 384, %v1784_v20  ;;  %v794_v15 = vsel %vm787_vm5, %v1961_v11, %v1802_v27  ;;  %v953_v27 = vsel %vm952_vm15, %v1861_v60, %v1967_v22  ;;  %v927_v60 = vsel %vm919_vm2, %v2152_v12, %v2005_v56 }
 0x29e   :  { %1028 = vmatpush.msra.mxu2 %v760_v18  ;;  %1408 = vmatmul.msk.f32.vlgmr.msrb.gmra.mxu1 %vm269_vm0, %v2142_v28  ;;  %v601_v18 = vand.u32 255, %v2156_v53 }
 0x29f   :  { %1056 = vmatpush.msra.mxu1 %v921_v13  ;;  %v897_v13 = vmul.f32 %v2197_v17, %v1868_v62  ;;  %v560_v53 = vand.u32 15, %v2216_v38 }
 0x2a0   :  { %1029 = vmatpush.msra.mxu2 %v759_v0  ;;  %v608_v0 = vand.u32 255, %v2216_v38  ;;  %vm633_vm14 = vcmp.ge.s32.totalorder %v601_v18, 16  ;;  %v790_v18 = vsel %vm787_vm5, %v1826_v45, %v1977_v29 }
 0x2a1   :  { %1057 = vmatpush.msra.mxu1 %v1831_v46  ;;  %v2226_v46 = vsel %vm669_vm12, 1.0, %v2667_v40  ;;  %vm658_vm7 = vcmp.gt.s32.totalorder %v560_v53, 0  ;;  %vm670_vm8 = vcmp.lt.s32.totalorder %v560_v53, 15 }
 0x2a2   :  { %v2221_v23 = vpop.permute.xlu1 %818  ;;  %1030 = vmatpush.msra.mxu2 %v735_v31  ;;  %v868_v62 = vmul.f32 %v2226_v46, %v855_v9  ;;  %v864_v31 = vmul.f32 %v2226_v46, %v1872_v1  ;;  %v1629_v1 = vmov 2   ;;  %vm2262_vm4 = vcmp.lt.s32.totalorder %v608_v0, 240 }
 0x2a3   :  { %1058 = vmatpush.msra.mxu1 %v901_v33  ;;  %v828_v57 = vsel %vm820_vm3, %v2221_v23, %v2056_v41  ;;  %v829_v41 = vmul.f32 %v2027_v35, %v1859_v59  ;;  %v2248_v33 = vmul.f32 %v2040_v6, %v2229_v4  ;;  %v762_v59 = vsel %vm754_vm9, %v2117_v50, %v2100_v26 }
 0x2a4   :  { %v833_v32 = vmul.f32 %v2027_v35, %v828_v57  ;;  %1031 = vmatpush.msra.mxu2 %v731_v49  ;;  %1439 = vset.pattern.permute.xlu1 %v1629_v1  ;;  %v761_v26 = vsel %vm754_vm9, %v1975_v37, %v1850_v55  ;;  %v767_v57 = vmul.f32 %v2229_v4, %v762_v59  ;;  %v2675_v59 = vld [vmem:[#allocation26_spill] sm:$0xff] }
 0x2a5   :  { %1059 = vmatpush.msra.mxu1 %v897_v13  ;;  %1032 = vmatmul.f32.vlgmr.msra.gmra.mxu2 %v2223_v47  ;;  %v800_v9 = vmul.f32 %v795_v30, %v2248_v33  ;;  %v796_v38 = vmul.f32 %v794_v15, %v2248_v33  ;;  %v835_v55 = vmul.f32 %v2197_v17, %v2089_v19 }
 0x2a6   :  { %984 = vmatpush.msrb.mxu0 %v833_v32  ;;  %970 = vperm.xlu1 %1439, %v1693_v63   ;;  %v2298_v63 = vsel %vm2262_vm4, 1.0, %v2667_v40  ;;  %v963_v32 = vmul.f32 %v2226_v46, %v953_v27  ;;  %v763_v56 = vmul.f32 %v2229_v4, %v761_v26  ;;  %v894_v30 = vsel %vm886_vm1, %v2108_v7, %v1984_v2 }
 0x2a7   :  { %1060 = vmatpush.msra.mxu1 %v868_v62  ;;  %v935_v12 = vmul.f32 %v2298_v63, %v927_v60  ;;  %v931_v0 = vmul.f32 %v2298_v63, %v1824_v43  ;;  %v758_v2 = vsel %vm754_vm9, %v2112_v21, %v2083_v5  ;;  %v757_v5 = vsel %vm754_vm9, %v1809_v36, %v2114_v14 }
 0x2a8   :  { %985 = vmatpush.msrb.mxu0 %v829_v41  ;;  %v725_v36 = vsel %vm721_vm11, %v1988_v39, %v2096_v8  ;;  %v724_v13 = vsel %vm721_vm11, %v2110_v24, %v2148_v58 }
 0x2a9   :  { %1061 = vmatpush.msra.mxu1 %v864_v31 }
 0x2aa   :  { %v2267_v49 = vpop.permute.xlu1 %950  ;;  %986 = vmatpush.msrb.mxu0 %v800_v9 }
 0x2ab   :  { %1062 = vmatpush.msra.mxu1 %v1908_v54  ;;  %v954_v50 = vsel %vm952_vm15, %v2003_v51, %v2267_v49  ;;  %v2284_v54 = vsel %vm633_vm14, 1.0, %v2667_v40  ;;  %v2301_v51 = vsel %vm658_vm7, 1.0, %v2667_v40 }
 0x2ac   :  { %v967_v62 = vmul.f32 %v2226_v46, %v954_v50  ;;  %987 = vmatpush.msrb.mxu0 %v796_v38  ;;  %v2309_v19 = vmul.f32 %v2226_v46, %v2284_v54  ;;  %v2328_v41 = vmul.f32 %v2301_v51, %v2298_v63  ;;  %v2352_v53 = vmul.f32 %v2197_v17, %v2284_v54  ;;  %v2677_v50 = vld [vmem:[#allocation28_spill] sm:$0xff] }
 0x2ad   :  { %1063 = vmatpush.msra.mxu1 %v1721_v10  ;;  %v831_v10 = vmul.f32 %v2197_v17, %v1843_v52  ;;  %v2322_v52 = vmul.f32 %v2027_v35, %v2229_v4  ;;  %v769_v9 = vmul.f32 %v2284_v54, %v758_v2  ;;  %v765_v1 = vmul.f32 %v2284_v54, %v757_v5 }
 0x2ae   :  { %988 = vmatpush.msrb.mxu0 %v767_v57  ;;  %1090 = vmatpush.msrb.mxu3 %v967_v62  ;;  %v802_v45 = vmul.f32 %v2094_v61, %v2309_v19  ;;  %v798_v43 = vmul.f32 %v790_v18, %v2309_v19  ;;  %v902_v31 = vmul.f32 %v894_v30, %v2328_v41  ;;  %v2678_v62 = vld [vmem:[#allocation25_spill] sm:$0xff] }
 0x2af   :  { %1064 = vmatpush.msra.mxu1 %v835_v55  ;;  %v898_v15 = vmul.f32 %v1820_v42, %v2328_v41  ;;  %v736_v27 = vmul.f32 %v725_v36, %v2352_v53  ;;  %v732_v26 = vmul.f32 %v724_v13, %v2352_v53  ;;  %v960_v57 = vsel %vm952_vm15, %v2267_v49, %v2677_v50 }
 0x2b0   :  { %989 = vmatpush.msrb.mxu0 %v763_v56  ;;  %1091 = vmatpush.msrb.mxu3 %v963_v32  ;;  %v822_v55 = vsel %vm820_vm3, %v2678_v62, %v2221_v23  ;;  %v959_v49 = vsel %vm952_vm15, %v1967_v22, %v2167_v16  ;;  %v2680_v23 = vld [vmem:[#allocation17_spill] sm:$0xff]  ;;  %v2682_v16 = vld [vmem:[#allocation18_spill] sm:$0xff] }
 0x2b1   :  { %1065 = vmatpush.msra.mxu1 %v831_v10  ;;  %1410 = vmatmul.msk.f32.vlgmr.msrb.gmra.mxu3 %vm269_vm0, %v2142_v28  ;;  %v836_v10 = vmul.f32 %v2301_v51, %v822_v55  ;;  %v832_v30 = vmul.f32 %v2301_v51, %v2682_v16 }
 0x2b2   :  { %1096 = vmatpush.msra.mxu3 %v935_v12  ;;  %v720_v7 = vpop.permute.xlu1 %719  ;;  %v2681_v12 = vld [vmem:[#allocation23_spill] sm:$0xff] }
 0x2b3   :  { %v729_v61 = vsel %vm721_vm11, %v720_v7, %v2119_v34  ;;  %1066 = vmatpush.msra.mxu1 %v802_v45  ;;  %v2356_v34 = vsel %vm670_vm8, 1.0, %v2667_v40  ;;  %v2676_v40 = vld [vmem:[#allocation19_spill] sm:$0xff]  ;;  %v789_v18 = vsel %vm787_vm5, %v2681_v12, %v2127_v44  ;;  %v723_v44 = vsel %vm721_vm11, %v2096_v8, %v720_v7 }
 0x2b4   :  { %1097 = vmatpush.msra.mxu3 %v931_v0  ;;  %v734_v21 = vmul.f32 %v729_v61, %v2322_v52  ;;  %v869_v42 = vmul.f32 %v2356_v34, %v2675_v59  ;;  %v865_v38 = vmul.f32 %v2356_v34, %v2676_v40  ;;  %v2382_v24 = vmul.f32 %v2356_v34, %v2298_v63 }
 0x2b5   :  { %1067 = vmatpush.msra.mxu1 %v798_v43  ;;  %v788_v0 = vsel %vm787_vm5, %v1977_v29, %v1961_v11  ;;  %v803_v45 = vmul.f32 %v2356_v34, %v789_v18  ;;  %v2683_v43 = vld [vmem:[#allocation27_spill] sm:$0xff]  ;;  %v755_v29 = vsel %vm754_vm9, %v2114_v14, %v1975_v37 }
 0x2b6   :  { %1098 = vmatpush.msra.mxu3 %v902_v31  ;;  %990 = vmatpush.msrb.mxu0 %v734_v21  ;;  %v968_v56 = vmul.f32 %v960_v57, %v2382_v24  ;;  %v964_v22 = vmul.f32 %v959_v49, %v2382_v24  ;;  %v799_v2 = vmul.f32 %v2356_v34, %v788_v0 }
 0x2b7   :  { %1068 = vmatpush.msra.mxu1 %v769_v9  ;;  %v737_v31 = vmul.f32 %v2301_v51, %v723_v44 }
 0x2b8   :  { %1099 = vmatpush.msra.mxu3 %v898_v15 }
 0x2b9   :  { %1069 = vmatpush.msra.mxu1 %v765_v1 }
 0x2ba   :  { %1100 = vmatpush.msra.mxu3 %v869_v42  ;;  %v718_v39 = vpop.permute.xlu1 %717 }
 0x2bb   :  { %v728_v60 = vsel %vm721_vm11, %v718_v39, %v2171_v3  ;;  %1070 = vmatpush.msra.mxu1 %v736_v27  ;;  %v2679_v3 = vld [vmem:[#allocation20_spill] sm:$0xff]  ;;  %v722_v11 = vsel %vm721_vm11, %v2148_v58, %v718_v39 }
 0x2bc   :  { %1101 = vmatpush.msra.mxu3 %v865_v38  ;;  %v730_v32 = vmul.f32 %v728_v60, %v2322_v52 }
 0x2bd   :  { %1071 = vmatpush.msra.mxu1 %v732_v26 }
 0x2be   :  { %1102 = vmatpush.msra.mxu3 %v2679_v3  ;;  %991 = vmatpush.msrb.mxu0 %v730_v32 }
 0x2bf   :  { %1072 = vmatmul.f32.vlgmr.msra.gmra.mxu1 %v2223_v47  ;;  %992 = vmatmul.f32.vlgmr.msrb.gmra.mxu0 %v2223_v47 }
 0x2c0   :  { %1103 = vmatpush.msra.mxu3 %v2680_v23  ;;  %1130 = vmatpush.msra.mxu0 %v968_v56 }
 0x2c2   :  { %1104 = vmatpush.msra.mxu3 %v836_v10  ;;  %1131 = vmatpush.msra.mxu0 %v964_v22 }
 0x2c4   :  { %1105 = vmatpush.msra.mxu3 %v832_v30 }
 0x2c6   :  { %1106 = vmatpush.msra.mxu3 %v803_v45 }
 0x2c7   :  { %1411 = vmatmul.msk.f32.vlgmr.msra.gmra.mxu0 %vm269_vm0, %v2142_v28  ;;  %v733_v28 = vmul.f32 %v2301_v51, %v722_v11  ;;  %vm1273_vm0 = vcmask 588800  }
 0x2c8   :  { %1107 = vmatpush.msra.mxu3 %v799_v2 }
 0x2ca   :  { %1108 = vmatpush.msra.mxu3 %v2683_v43 }
 0x2cc   :  { %1109 = vmatpush.msra.mxu3 %v755_v29 }
 0x2ce   :  { %1110 = vmatpush.msra.mxu3 %v737_v31 }
 0x2d0   :  { %1111 = vmatpush.msra.mxu3 %v733_v28  ;;  %v2684_v28 = vld [vmem:[#allocation22_spill] sm:$0xff] }
 0x2d1   :  { %1112 = vmatmul.f32.vlgmr.msra.gmra.mxu3 %v2223_v47 }
 0x2f8   :  { %v1053_v37 = vpop.f32.mrf.mxu3 }
 0x318   :  { %v971_v8 = vpop.permute.xlu1 %970 }
 0x31b   :  { %v1013_v5 = vpop.f32.mrf.mxu1 }
 0x328   :  { %v1033_v21 = vpop.f32.mrf.mxu2 }
 0x329   :  { %v1034_v9 = vadd.f32 %v1033_v21, %v971_v8 }
 0x32b   :  { %v1054_v14 = vadd.f32 %v1053_v37, %v1034_v9 }
 0x32d   :  { %v2436_v47 = vmax.f32 %v1054_v14, 0.0 }
 0x334   :  { %v1093_v59 = vpop.f32.mrf.mxu3 }
 0x33c   :  { %v993_v7 = vpop.f32.mrf.mxu0  ;;  %v1073_v36 = vpop.f32.mrf.mxu1 }
 0x33d   :  { %v994_v61 = vadd.f32 %v993_v7, %v971_v8  ;;  %v1074_v42 = vadd.f32 %v1073_v36, %v971_v8 }
 0x33f   :  { %v1014_v58 = vadd.f32 %v1013_v5, %v994_v61  ;;  %v1094_v1 = vadd.f32 %v1093_v59, %v1074_v42  ;;  %v2685_v61 = vld [vmem:[#allocation21_spill] sm:$0xff]  ;;  %v2686_v5 = vld [vmem:[#allocation24_spill] sm:$0xff] }
 0x341   :  { %v2428_v15 = vmax.f32 %v1014_v58, 0.0  ;;  %v2450_v40 = vmax.f32 %v1094_v1, 0.0 }
 0x343   :  { %1157 = vrot.lane.b32.xlu0 %v2428_v15, %s1626_s9  ;;  %1221 = vrot.lane.b32.xlu1 %v2428_v15, %s1621_s27 }
 0x344   :  { %1253 = vrot.lane.b32.xlu2 %v2428_v15, %s1622_s28  ;;  %v1133_v27 = vpop.f32.mrf.mxu0 }
 0x34b   :  { %1255 = vrot.lane.b32.xlu0 %v2436_v47, %s1622_s28  ;;  %1189 = vrot.lane.b32.xlu1 %v2428_v15, %s1624_s30 }
 0x34c   :  { %1237 = vrot.lane.b32.xlu2 %v2428_v15, %s1620_s0 }
 0x353   :  { %1207 = vrot.lane.b32.xlu0 %v2436_v47, %s1623_s29  ;;  %1239 = vrot.lane.b32.xlu1 %v2436_v47, %s1620_s0 }
 0x354   :  { %1205 = vrot.lane.b32.xlu2 %v2428_v15, %s1623_s29  ;;  %v1113_v13 = vpop.f32.mrf.mxu3 }
 0x355   :  { %v1114_v38 = vadd.f32 %v1113_v13, %v971_v8 }
 0x357   :  { %v1134_v39 = vadd.f32 %v1133_v27, %v1114_v38 }
 0x359   :  { %v2458_v26 = vmax.f32 %v1134_v39, 0.0 }
 0x35b   :  { %1241 = vrot.lane.b32.xlu0 %v2450_v40, %s1620_s0  ;;  %1225 = vrot.lane.b32.xlu1 %v2450_v40, %s1621_s27 }
 0x35c   :  { %1173 = vrot.lane.b32.xlu2 %v2428_v15, %s1625_s8 }
 0x363   :  { %1177 = vrot.lane.b32.xlu0 %v2450_v40, %s1625_s8  ;;  %1259 = vrot.lane.b32.xlu1 %v2458_v26, %s1622_s28 }
 0x364   :  { %1141 = vrot.lane.b32.xlu2 %v2428_v15, %s1627_s10 }
 0x36b   :  { %1145 = vrot.lane.b32.xlu0 %v2450_v40, %s1627_s10  ;;  %1211 = vrot.lane.b32.xlu1 %v2458_v26, %s1623_s29 }
 0x36c   :  { %1223 = vrot.lane.b32.xlu2 %v2436_v47, %s1621_s27 }
 0x373   :  { %1243 = vrot.lane.b32.xlu0 %v2458_v26, %s1620_s0  ;;  %1179 = vrot.lane.b32.xlu1 %v2458_v26, %s1625_s8 }
 0x374   :  { %1257 = vrot.lane.b32.xlu2 %v2450_v40, %s1622_s28 }
 0x37b   :  { %1227 = vrot.lane.b32.xlu0 %v2458_v26, %s1621_s27  ;;  %1163 = vrot.lane.b32.xlu1 %v2458_v26, %s1626_s9 }
 0x37c   :  { %1193 = vrot.lane.b32.xlu2 %v2450_v40, %s1624_s30 }
 0x383   :  { %1195 = vrot.lane.b32.xlu0 %v2458_v26, %s1624_s30  ;;  %1147 = vrot.lane.b32.xlu1 %v2458_v26, %s1627_s10 }
 0x384   :  { %1209 = vrot.lane.b32.xlu2 %v2450_v40, %s1623_s29 }
 0x38b   :  { %1191 = vrot.lane.b32.xlu0 %v2436_v47, %s1624_s30  ;;  %1175 = vrot.lane.b32.xlu1 %v2436_v47, %s1625_s8 }
 0x38c   :  { %1161 = vrot.lane.b32.xlu2 %v2450_v40, %s1626_s9 }
 0x393   :  { %1143 = vrot.lane.b32.xlu0 %v2436_v47, %s1627_s10 }
 0x394   :  { %1159 = vrot.lane.b32.xlu2 %v2436_v47, %s1626_s9 }
 0x39e   :  { %v1254_v50 = vpop.permute.xlu2 %1253 }
 0x3a6   :  { %v1238_v57 = vpop.permute.xlu2 %1237 }
 0x3ae   :  { %v2500_v60 = vpop.permute.xlu2 %1205 }
 0x3b5   :  { %v2502_v62 = vpop.permute.xlu0 %1157  ;;  %v2504_v55 = vpop.permute.xlu1 %1221 }
 0x3b6   :  { %v2506_v32 = vpop.permute.xlu2 %1173 }
 0x3bd   :  { %v1256_v49 = vpop.permute.xlu0 %1255  ;;  %v2508_v3 = vpop.permute.xlu1 %1189 }
 0x3be   :  { %v1263_v56 = vsel %vm952_vm15, %v1254_v50, %v1256_v49  ;;  %v2512_v10 = vpop.permute.xlu2 %1141 }
 0x3bf   :  { %v1265_v23 = vmul.f32 %v2040_v6, %v1263_v56 }
 0x3c1   :  { %1284 = vmatpush.msrb.mxu2 %v1265_v23  ;;  %v1630_v23 = vmov 3  }
 0x3c2   :  { %1440 = vset.pattern.permute.xlu1 %v1630_v23  ;;  %1441 = vset.pattern.permute.xlu0 %v1630_v23 }
 0x3c5   :  { %v1208_v12 = vpop.permute.xlu0 %1207  ;;  %v1240_v18 = vpop.permute.xlu1 %1239 }
 0x3c6   :  { %v1224_v22 = vpop.permute.xlu2 %1223  ;;  %v1247_v16 = vsel %vm919_vm2, %v1238_v57, %v1240_v18  ;;  %v1215_v30 = vsel %vm853_vm6, %v2500_v60, %v1208_v12 }
 0x3c7   :  { %v1231_v0 = vsel %vm886_vm1, %v2504_v55, %v1224_v22  ;;  %1285 = vmatpush.msrb.mxu2 %v1247_v16  ;;  %v1217_v2 = vmul.f32 %v2040_v6, %v1215_v30 }
 0x3c8   :  { %v1233_v45 = vmul.f32 %v2027_v35, %v1231_v0 }
 0x3ca   :  { %1286 = vmatpush.msrb.mxu2 %v1233_v45 }
 0x3cc   :  { %1287 = vmatpush.msrb.mxu2 %v1217_v2 }
 0x3cd   :  { %v1242_v44 = vpop.permute.xlu0 %1241  ;;  %v1226_v43 = vpop.permute.xlu1 %1225 }
 0x3ce   :  { %1288 = vmatpush.msrb.mxu2 %v2428_v15  ;;  %v1258_v11 = vpop.permute.xlu2 %1257  ;;  %v1246_v29 = vsel %vm919_vm2, %v1240_v18, %v1242_v44  ;;  %v1230_v7 = vsel %vm886_vm1, %v1224_v22, %v1226_v43 }
 0x3cf   :  { %v1262_v31 = vsel %vm952_vm15, %v1256_v49, %v1258_v11  ;;  %v1250_v6 = vmul.f32 %v2685_v61, %v1246_v29  ;;  %v1234_v21 = vmul.f32 %v1230_v7, %v2686_v5 }
 0x3d0   :  { %v1266_v8 = vmul.f32 %v1262_v31, %v2684_v28 }
 0x3d2   :  { %1304 = vmatpush.msrb.mxu0 %v1266_v8 }
 0x3d4   :  { %1305 = vmatpush.msrb.mxu0 %v1250_v6 }
 0x3d5   :  { %v2535_v58 = vpop.permute.xlu0 %1177  ;;  %v1260_v15 = vpop.permute.xlu1 %1259 }
 0x3d6   :  { %v1261_v9 = vsel %vm952_vm15, %v1258_v11, %v1260_v15  ;;  %v1264_v37 = vsel %vm952_vm15, %v1260_v15, %v1254_v50  ;;  %1306 = vmatpush.msrb.mxu0 %v1234_v21  ;;  %v2541_v14 = vpop.permute.xlu2 %1193  ;;  %v1140_v15 = vld [vmem:[#allocation11] sm:$0xff] }
 0x3d7   :  { %v1267_v36 = vmul.f32 %v2226_v46, %v1261_v9  ;;  %v1268_v59 = vmul.f32 %v1264_v37, %v2382_v24 }
 0x3d9   :  { %1324 = vmatpush.msrb.mxu1 %v1267_v36  ;;  %1344 = vmatpush.msrb.mxu3 %v1268_v59 }
 0x3dd   :  { %v2545_v42 = vpop.permute.xlu0 %1145  ;;  %v1212_v1 = vpop.permute.xlu1 %1211 }
 0x3de   :  { %v1210_v13 = vpop.permute.xlu2 %1209 }
 0x3df   :  { %v1214_v38 = vsel %vm853_vm6, %v1208_v12, %v1210_v13  ;;  %v1458_v12 = vld [vmem:[%s2648_s6] sm:$0xff]  ;;  %v1213_v22 = vsel %vm853_vm6, %v1210_v13, %v1212_v1  ;;  %s1631_s6 = smov [#allocation12]  }
 0x3e0   :  { %v1218_v27 = vmul.f32 %v1995_v48, %v1214_v38  ;;  %1270 = vperm.xlu1 %1440, %v1458_v12   ;;  %v1219_v2 = vmul.f32 %v2226_v46, %v1213_v22  ;;  %s1370_s13 = sshll.u32 %s1631_s6, 4  ;;  %s1371_s13 = int_to_ptr.vmem [resolvable:$true] %s1370_s13 }
 0x3e2   :  { %1307 = vmatpush.msrb.mxu0 %v1218_v27 }
 0x3e4   :  { %1308 = vmatpush.msrb.mxu0 %v2436_v47 }
 0x3e5   :  { %v1244_v39 = vpop.permute.xlu0 %1243  ;;  %v1180_v50 = vpop.permute.xlu1 %1179 }
 0x3e6   :  { %v1248_v49 = vsel %vm919_vm2, %v1244_v39, %v1238_v57  ;;  %v1245_v24 = vsel %vm919_vm2, %v1242_v44, %v1244_v39  ;;  %v1216_v57 = vsel %vm853_vm6, %v1212_v1, %v2500_v60  ;;  %v1162_v60 = vpop.permute.xlu2 %1161 }
 0x3e7   :  { %v1252_v56 = vmul.f32 %v2298_v63, %v1248_v49  ;;  %1325 = vmatpush.msrb.mxu1 %v1245_v24  ;;  %v1220_v45 = vmul.f32 %v2356_v34, %v1216_v57 }
 0x3e9   :  { %1345 = vmatpush.msrb.mxu3 %v1252_v56 }
 0x3ed   :  { %v1228_v47 = vpop.permute.xlu0 %1227  ;;  %v1164_v18 = vpop.permute.xlu1 %1163 }
 0x3ee   :  { %v1229_v63 = vsel %vm886_vm1, %v1226_v43, %v1228_v47  ;;  %v1232_v16 = vsel %vm886_vm1, %v1228_v47, %v2504_v55  ;;  %v1181_v55 = vsel %vm787_vm5, %v2535_v58, %v1180_v50  ;;  %v1168_v29 = vsel %vm754_vm9, %v1164_v18, %v2502_v62  ;;  %v1160_v61 = vpop.permute.xlu2 %1159 }
 0x3ef   :  { %v1235_v30 = vmul.f32 %v2197_v17, %v1229_v63  ;;  %v1236_v0 = vmul.f32 %v1232_v16, %v2328_v41  ;;  %v1184_v41 = vsel %vm787_vm5, %v1180_v50, %v2506_v32  ;;  %v1188_v28 = vmul.f32 %v2356_v34, %v1181_v55 }
 0x3f0   :  { %v1185_v31 = vmul.f32 %v1184_v41, %v2248_v33  ;;  %v1169_v7 = vmul.f32 %v2229_v4, %v1168_v29  ;;  %v1165_v33 = vsel %vm754_vm9, %v1162_v60, %v1164_v18 }
 0x3f1   :  { %1326 = vmatpush.msrb.mxu1 %v1235_v30  ;;  %1346 = vmatpush.msrb.mxu3 %v1236_v0 }
 0x3f3   :  { %1327 = vmatpush.msrb.mxu1 %v1219_v2  ;;  %1347 = vmatpush.msrb.mxu3 %v1220_v45 }
 0x3f5   :  { %v1196_v44 = vpop.permute.xlu0 %1195  ;;  %v1148_v11 = vpop.permute.xlu1 %1147  ;;  %1328 = vmatpush.msrb.mxu1 %v2450_v40  ;;  %1348 = vmatpush.msrb.mxu3 %v2458_v26 }
 0x3f6   :  { %v1197_v46 = vsel %vm820_vm3, %v2541_v14, %v1196_v44  ;;  %v1200_v43 = vsel %vm820_vm3, %v1196_v44, %v2508_v3  ;;  %v1149_v8 = vsel %vm721_vm11, %v2545_v42, %v1148_v11 }
 0x3f7   :  { %v1201_v40 = vmul.f32 %v2027_v35, %v1200_v43  ;;  %v1204_v26 = vmul.f32 %v2301_v51, %v1197_v46  ;;  %v1152_v35 = vsel %vm721_vm11, %v1148_v11, %v2512_v10  ;;  %v1156_v6 = vmul.f32 %v2301_v51, %v1149_v8 }
 0x3f8   :  { %v1153_v34 = vmul.f32 %v1152_v35, %v2322_v52 }
 0x3f9   :  { %1289 = vmatpush.msrb.mxu2 %v1201_v40  ;;  %1349 = vmatpush.msrb.mxu3 %v1204_v26 }
 0x3fb   :  { %1290 = vmatpush.msrb.mxu2 %v1185_v31  ;;  %1350 = vmatpush.msrb.mxu3 %v1188_v28 }
 0x3fd   :  { %v1192_v5 = vpop.permute.xlu0 %1191  ;;  %v1176_v21 = vpop.permute.xlu1 %1175  ;;  %1291 = vmatpush.msrb.mxu2 %v1169_v7  ;;  %1351 = vmatpush.msrb.mxu3 %v1165_v33 }
 0x3fe   :  { %v1198_v4 = vsel %vm820_vm3, %v1192_v5, %v2541_v14  ;;  %v1199_v9 = vsel %vm820_vm3, %v2508_v3, %v1192_v5  ;;  %v1182_v52 = vsel %vm787_vm5, %v1176_v21, %v2535_v58  ;;  %v1183_v51 = vsel %vm787_vm5, %v2506_v32, %v1176_v21 }
 0x3ff   :  { %v1202_v37 = vmul.f32 %v2063_v25, %v1199_v9  ;;  %v1203_v36 = vmul.f32 %v2197_v17, %v1198_v4  ;;  %1292 = vmatpush.msrb.mxu2 %v1153_v34  ;;  %v1166_v14 = vsel %vm754_vm9, %v1160_v61, %v1162_v60  ;;  %1352 = vmatpush.msrb.mxu3 %v1156_v6 }
 0x400   :  { %1412 = vmatmul.msk.f32.vlgmr.msrb.gmra.mxu2 %vm1273_vm0, %v1140_v15  ;;  %v1186_v3 = vmul.f32 %v1995_v48, %v1183_v51  ;;  %v1187_v59 = vmul.f32 %v1182_v52, %v2309_v19  ;;  %1415 = vmatmul.msk.f32.vlgmr.msrb.gmra.mxu3 %vm1273_vm0, %v1140_v15  ;;  %v1171_v32 = vmul.f32 %v2284_v54, %v1166_v14 }
 0x401   :  { %1309 = vmatpush.msrb.mxu0 %v1202_v37  ;;  %1329 = vmatpush.msrb.mxu1 %v1203_v36  ;;  %v1167_v17 = vsel %vm754_vm9, %v2502_v62, %v1160_v61 }
 0x403   :  { %1310 = vmatpush.msrb.mxu0 %v1186_v3  ;;  %1330 = vmatpush.msrb.mxu1 %v1187_v59 }
 0x405   :  { %v1144_v58 = vpop.permute.xlu0 %1143  ;;  %1311 = vmatpush.msrb.mxu0 %v1167_v17  ;;  %1331 = vmatpush.msrb.mxu1 %v1171_v32 }
 0x406   :  { %v1150_v48 = vsel %vm721_vm11, %v1144_v58, %v2545_v42  ;;  %v1151_v19 = vsel %vm721_vm11, %v2512_v10, %v1144_v58 }
 0x407   :  { %v1154_v1 = vmul.f32 %v2063_v25, %v1151_v19  ;;  %v1155_v54 = vmul.f32 %v1150_v48, %v2352_v53 }
 0x409   :  { %1312 = vmatpush.msrb.mxu0 %v1154_v1  ;;  %1332 = vmatpush.msrb.mxu1 %v1155_v54 }
 0x40a   :  { %1413 = vmatmul.msk.f32.vlgmr.msrb.gmra.mxu0 %vm1273_vm0, %v1140_v15  ;;  %1414 = vmatmul.msk.f32.vlgmr.msrb.gmra.mxu1 %vm1273_vm0, %v1140_v15 }
 0x452   :  { %v1271_v62 = vpop.permute.xlu1 %1270 }
 0x483   :  { %v1294_v13 = vpop.f32.mrf.mxu2  ;;  %v1354_v27 = vpop.f32.mrf.mxu3 }
 0x484   :  { %v1295_v38 = vadd.f32 %v1294_v13, %v1271_v62  ;;  %v1355_v42 = vadd.f32 %v1354_v27, %v1271_v62 }
 0x486   :  { %v1357_v39 = vmax.f32 %v1295_v38, 0.0  ;;  %v1360_v25 = vmax.f32 %v1355_v42, 0.0 }
 0x487   :  { %v1314_v50 = vpop.f32.mrf.mxu0  ;;  %v1334_v49 = vpop.f32.mrf.mxu1 }
 0x488   :  { %1361 = vst [vmem:[#allocation12] sm:$0xff] %v1357_v39  ;;  %v1315_v20 = vadd.f32 %v1314_v50, %v1271_v62  ;;  %v1335_v10 = vadd.f32 %v1334_v49, %v1271_v62 }
 0x489   :  { %1364 = vst [vmem:[#allocation12 + $0x18] sm:$0xff] %v1360_v25 }
 0x48a   :  { %v1358_v53 = vmax.f32 %v1315_v20, 0.0  ;;  %v1359_v24 = vmax.f32 %v1335_v10, 0.0 }
 0x48c   :  { %1362 = vst [vmem:[#allocation12 + $0x8] sm:$0xff] %v1358_v53 }
 0x48d   :  { %1363 = vst [vmem:[#allocation12 + $0x10] sm:$0xff] %v1359_v24 }
 0x48e   :  { %1375 = dma.vmem_to_hbm [thread:$0]  %s1371_s13, 512, %s1373_s2, [#allocation5]  }
 0x48f   :  { %1609 = dma.done.wait [#allocation5], 512  }
 0x490   :  { %1610 = vsyncadd [#allocation5], 4294966784 }
 0x491   :  { %1380 = vsyncpa [#allocation4], 1 }
 0x492   :  { %1381 = vsyncpa [#allocation7], 1 }
 0x493   :  { %1382 = vsyncpa [#allocation10], 1 }
 0x494   :  { %1383 = vsyncpa [#allocation5], 1 }

</bundles_post_ra>
